<compile_context>
chip_gen: v7x
topology: tpu7x:2x2x1
jax: 0.10.0
libtpu: 0.0.40
codegen_flags: <defaults>
</compile_context>

<pallas_src>
import jax
import jax.numpy as jnp
from jax import lax
from jax.experimental import pallas as pl
from jax.experimental.pallas import tpu as pltpu

EPS = 1e-5          # nn.BatchNorm1d default
NEG_SLOPE = 0.01    # nn.LeakyReLU default
_HIGHEST = jax.lax.Precision.HIGHEST


def _inv_symmetry_kernel(x_ref, w_ref, misc_ref, o_ref):
    """Fused MLP: (Linear -> BatchNorm(batch stats) -> LeakyReLU) * L -> Linear.

    Shapes (lane-dense, Hp a multiple of 128):
      x_ref:    (B, Hp)          padded flattened coordinates
      w_ref:    (L+1, Hp, Hp)    L hidden-layer weights + output projection
      misc_ref: (2L+1, 1, Hp)    rows [0..L) gamma, [L..2L) beta, row 2L b_out
      o_ref:    (B, Hp)          padded output (real cols = first n_out)
    """
    h = x_ref[...]                                   # (B, Hp) f32
    n_layer = w_ref.shape[0] - 1                     # static
    inv_b = 1.0 / h.shape[0]

    for l in range(n_layer):                         # tiny static unroll (L=5)
        # Linear (bias dropped: exactly cancelled by BN mean subtraction).
        h = jnp.dot(h, w_ref[l], precision=_HIGHEST,
                    preferred_element_type=jnp.float32)
        # BatchNorm1d, one-pass batch statistics (sum / sum-of-squares are
        # independent reductions -> shorter serial chain than mean->centered).
        s1 = jnp.sum(h, axis=0, keepdims=True)
        s2 = jnp.sum(h * h, axis=0, keepdims=True)
        mean = s1 * inv_b
        var = s2 * inv_b - mean * mean
        scale = misc_ref[l] * lax.rsqrt(var + EPS)            # gamma folded in
        shift = misc_ref[n_layer + l] - mean * scale          # beta folded in
        h = h * scale + shift                                 # 2 full-width ops
        # LeakyReLU
        h = jnp.maximum(h, NEG_SLOPE * h)

    out = jnp.dot(h, w_ref[n_layer], precision=_HIGHEST,
                  preferred_element_type=jnp.float32)
    o_ref[...] = out + misc_ref[2 * n_layer]


def prepare_params(params, *, lane=128):
    """One-time padding/packing of x-independent tensors (hoisted off the
    per-call path).  Returns (w_all, misc)."""
    W_in, W_hid = params["W_in"], params["W_hid"]        # (fin,H), (L-1,H,H)
    gamma, beta = params["gamma"], params["beta"]        # (L,H), (L,H)
    W_out, b_out = params["W_out"], params["b_out"]      # (H,n_out), (n_out,)

    fin, H = W_in.shape
    n_out = W_out.shape[1]
    L = 1 + W_hid.shape[0]
    Hp = pl.cdiv(max(H, fin, n_out), lane) * lane        # lane-dense width

    # Zero padding is semantically neutral: padded weight rows/cols and b_out
    # entries are zero, so padded hidden features stay exactly 0 through BN
    # (0*scale + (0 - 0*scale) = 0) and LeakyReLU.
    w_all = jnp.zeros((L + 1, Hp, Hp), jnp.float32)
    w_all = w_all.at[0, :fin, :H].set(W_in.astype(jnp.float32))
    if L > 1:
        w_all = w_all.at[1:L, :H, :H].set(W_hid.astype(jnp.float32))
    w_all = w_all.at[L, :H, :n_out].set(W_out.astype(jnp.float32))

    misc = jnp.zeros((2 * L + 1, 1, Hp), jnp.float32)
    misc = misc.at[:L, 0, :H].set(gamma.astype(jnp.float32))
    misc = misc.at[L:2 * L, 0, :H].set(beta.astype(jnp.float32))
    misc = misc.at[2 * L, 0, :n_out].set(b_out.astype(jnp.float32))

    return w_all, misc


def inv_symmetry_forward(coordinates, w_all, misc, *, n_out=3):
    """coordinates: (B, n_atom, 3) f32 -> (B, n_out) f32."""
    B = coordinates.shape[0]
    coords = coordinates.reshape(B, -1).astype(jnp.float32)   # (B, n_atom*3)
    fin = coords.shape[1]
    Hp = w_all.shape[1]
    L = w_all.shape[0] - 1

    # Only the x-dependent padding happens per call.
    x = jnp.zeros((B, Hp), jnp.float32).at[:, :fin].set(coords)

    cost = pl.CostEstimate(
        flops=2 * B * Hp * Hp * (L + 1) + 8 * B * Hp * L,
        transcendentals=L * Hp,
        bytes_accessed=4 * (2 * B * Hp + (L + 1) * Hp * Hp + (2 * L + 1) * Hp),
    )

    vmem = pl.BlockSpec(memory_space=pltpu.MemorySpace.VMEM)
    out_padded = pl.pallas_call(
        _inv_symmetry_kernel,
        out_shape=jax.ShapeDtypeStruct((B, Hp), jnp.float32),
        in_specs=[vmem, vmem, vmem],
        out_specs=vmem,
        cost_estimate=cost,
    )(x, w_all, misc)

    return out_padded[:, :n_out]


def inv_symmetry_ref(coordinates, params):
    """Pure-JAX reference with PyTorch-equivalent math (unpadded, with hidden
    biases; BN cancels them exactly)."""
    B = coordinates.shape[0]
    h = coordinates.reshape(B, -1).astype(jnp.float32)
    Ws = [params["W_in"]] + [params["W_hid"][i]
                             for i in range(params["W_hid"].shape[0])]
    bs = [params["b_in"]] + [params["b_hid"][i]
                             for i in range(params["b_hid"].shape[0])]
    for l in range(len(Ws)):
        h = jnp.dot(h, Ws[l], precision=_HIGHEST) + bs[l]
        mean = h.mean(axis=0, keepdims=True)
        var = ((h - mean) ** 2).mean(axis=0, keepdims=True)
        h = (h - mean) / jnp.sqrt(var + EPS)
        h = h * params["gamma"][l] + params["beta"][l]
        h = jnp.where(h >= 0, h, NEG_SLOPE * h)
    return jnp.dot(h, params["W_out"], precision=_HIGHEST) + params["b_out"]


if __name__ == "__main__":
    key = jax.random.PRNGKey(0)

    # Module defaults: n_atom=5, n_layer=5, h_dimension=64, act=LeakyReLU.
    n_atom, n_layer, h_dim, n_out = 5, 5, 64, 3
    batch = 8
    fin = n_atom * 3

    keys = jax.random.split(key, 10)
    coordinates = jax.random.normal(keys[0], (batch, n_atom, 3), jnp.float32)

    scale = 0.2
    params = {
        "W_in": scale * jax.random.normal(keys[1], (fin, h_dim), jnp.float32),
        "b_in": scale * jax.random.normal(keys[2], (h_dim,), jnp.float32),
        "W_hid": scale * jax.random.normal(keys[3], (n_layer - 1, h_dim, h_dim),
                                           jnp.float32),
        "b_hid": scale * jax.random.normal(keys[4], (n_layer - 1, h_dim),
                                           jnp.float32),
        # BatchNorm affine params (init: weight=1, bias=0; perturb to test path)
        "gamma": 1.0 + 0.1 * jax.random.normal(keys[5], (n_layer, h_dim),
                                               jnp.float32),
        "beta": 0.1 * jax.random.normal(keys[6], (n_layer, h_dim), jnp.float32),
        "W_out": scale * jax.random.normal(keys[7], (h_dim, n_out), jnp.float32),
        "b_out": scale * jax.random.normal(keys[8], (n_out,), jnp.float32),
    }

    # One-time parameter packing/padding (hoisted out of the per-call path).
    w_all, misc = prepare_params(params)
    w_all, misc = jax.block_until_ready((w_all, misc))

    fwd = jax.jit(inv_symmetry_forward, static_argnames=("n_out",))
    out = fwd(coordinates, w_all, misc, n_out=n_out)
    out = jax.block_until_ready(out)

    ref = inv_symmetry_ref(coordinates, params)
    assert out.shape == (batch, n_out), out.shape
    assert jnp.allclose(out, ref, atol=5e-3, rtol=5e-3), (
        f"mismatch vs reference: max abs err "
        f"{float(jnp.max(jnp.abs(out - ref)))}")

    print("KERNEL_OK")
</pallas_src>

<mosaic_0001>
module attributes {stable_mosaic.version = 11 : i64} {
  func.func @_inv_symmetry_kernel(%arg0: memref<8x128xf32, #tpu.memory_space<vmem>>, %arg1: memref<6x128x128xf32, #tpu.memory_space<vmem>>, %arg2: memref<11x1x128xf32, #tpu.memory_space<vmem>>, %arg3: memref<8x128xf32, #tpu.memory_space<vmem>>) attributes {dimension_semantics = [], scalar_prefetch = 0 : i64, scratch_operands = 0 : i64, tpu.core_type = #tpu.core_type<tc>} {
    %c0 = arith.constant 0 : index
    %c0_0 = arith.constant 0 : index
    %0 = vector.load %arg0[%c0, %c0_0] : memref<8x128xf32, #tpu.memory_space<vmem>>, vector<8x128xf32>
    %c0_1 = arith.constant 0 : index
    %c0_2 = arith.constant 0 : index
    %c0_3 = arith.constant 0 : index
    %1 = vector.load %arg1[%c0_1, %c0_2, %c0_3] : memref<6x128x128xf32, #tpu.memory_space<vmem>>, vector<1x128x128xf32>
    %2 = vector.shape_cast %1 : vector<1x128x128xf32> to vector<128x128xf32>
    %cst = arith.constant dense<0.000000e+00> : vector<8x128xf32>
    %3 = tpu.matmul %0, %2, %cst {dimension_numbers = #tpu.dot_dimension_numbers<[1], [0], [0], [1], [0, 0, 1, 1], [], []>, precision = #tpu.contract_precision<fp32>} : vector<8x128xf32>, vector<128x128xf32>, vector<8x128xf32> -> vector<8x128xf32>
    %cst_4 = arith.constant dense<0.000000e+00> : vector<128xf32>
    %4 = vector.multi_reduction <add>, %3, %cst_4 [0] : vector<8x128xf32> to vector<128xf32>
    %5 = vector.shape_cast %4 : vector<128xf32> to vector<1x128xf32>
    %6 = arith.mulf %3, %3 : vector<8x128xf32>
    %cst_5 = arith.constant dense<0.000000e+00> : vector<128xf32>
    %7 = vector.multi_reduction <add>, %6, %cst_5 [0] : vector<8x128xf32> to vector<128xf32>
    %8 = vector.shape_cast %7 : vector<128xf32> to vector<1x128xf32>
    %cst_6 = arith.constant 1.250000e-01 : f32
    %9 = vector.broadcast %cst_6 : f32 to vector<1x128xf32>
    %10 = arith.mulf %5, %9 : vector<1x128xf32>
    %cst_7 = arith.constant 1.250000e-01 : f32
    %11 = vector.broadcast %cst_7 : f32 to vector<1x128xf32>
    %12 = arith.mulf %8, %11 : vector<1x128xf32>
    %13 = arith.mulf %10, %10 : vector<1x128xf32>
    %14 = arith.subf %12, %13 : vector<1x128xf32>
    %c0_8 = arith.constant 0 : index
    %c0_9 = arith.constant 0 : index
    %c0_10 = arith.constant 0 : index
    %15 = vector.load %arg2[%c0_8, %c0_9, %c0_10] : memref<11x1x128xf32, #tpu.memory_space<vmem>>, vector<1x1x128xf32>
    %16 = vector.shape_cast %15 : vector<1x1x128xf32> to vector<1x128xf32>
    %cst_11 = arith.constant 9.99999974E-6 : f32
    %17 = vector.broadcast %cst_11 : f32 to vector<1x128xf32>
    %18 = arith.addf %14, %17 : vector<1x128xf32>
    %19 = math.rsqrt %18 : vector<1x128xf32>
    %20 = arith.mulf %16, %19 : vector<1x128xf32>
    %c5 = arith.constant 5 : index
    %c0_12 = arith.constant 0 : index
    %c0_13 = arith.constant 0 : index
    %21 = vector.load %arg2[%c5, %c0_12, %c0_13] : memref<11x1x128xf32, #tpu.memory_space<vmem>>, vector<1x1x128xf32>
    %22 = vector.shape_cast %21 : vector<1x1x128xf32> to vector<1x128xf32>
    %23 = arith.mulf %10, %20 : vector<1x128xf32>
    %24 = arith.subf %22, %23 : vector<1x128xf32>
    %25 = vector.broadcast %20 : vector<1x128xf32> to vector<8x128xf32>
    %26 = arith.mulf %3, %25 : vector<8x128xf32>
    %27 = vector.broadcast %24 : vector<1x128xf32> to vector<8x128xf32>
    %28 = arith.addf %26, %27 : vector<8x128xf32>
    %cst_14 = arith.constant 0.00999999977 : f32
    %29 = vector.broadcast %cst_14 : f32 to vector<8x128xf32>
    %30 = arith.mulf %29, %28 : vector<8x128xf32>
    %31 = arith.maximumf %28, %30 : vector<8x128xf32>
    %c1 = arith.constant 1 : index
    %c0_15 = arith.constant 0 : index
    %c0_16 = arith.constant 0 : index
    %32 = vector.load %arg1[%c1, %c0_15, %c0_16] : memref<6x128x128xf32, #tpu.memory_space<vmem>>, vector<1x128x128xf32>
    %33 = vector.shape_cast %32 : vector<1x128x128xf32> to vector<128x128xf32>
    %cst_17 = arith.constant dense<0.000000e+00> : vector<8x128xf32>
    %34 = tpu.matmul %31, %33, %cst_17 {dimension_numbers = #tpu.dot_dimension_numbers<[1], [0], [0], [1], [0, 0, 1, 1], [], []>, precision = #tpu.contract_precision<fp32>} : vector<8x128xf32>, vector<128x128xf32>, vector<8x128xf32> -> vector<8x128xf32>
    %cst_18 = arith.constant dense<0.000000e+00> : vector<128xf32>
    %35 = vector.multi_reduction <add>, %34, %cst_18 [0] : vector<8x128xf32> to vector<128xf32>
    %36 = vector.shape_cast %35 : vector<128xf32> to vector<1x128xf32>
    %37 = arith.mulf %34, %34 : vector<8x128xf32>
    %cst_19 = arith.constant dense<0.000000e+00> : vector<128xf32>
    %38 = vector.multi_reduction <add>, %37, %cst_19 [0] : vector<8x128xf32> to vector<128xf32>
    %39 = vector.shape_cast %38 : vector<128xf32> to vector<1x128xf32>
    %cst_20 = arith.constant 1.250000e-01 : f32
    %40 = vector.broadcast %cst_20 : f32 to vector<1x128xf32>
    %41 = arith.mulf %36, %40 : vector<1x128xf32>
    %cst_21 = arith.constant 1.250000e-01 : f32
    %42 = vector.broadcast %cst_21 : f32 to vector<1x128xf32>
    %43 = arith.mulf %39, %42 : vector<1x128xf32>
    %44 = arith.mulf %41, %41 : vector<1x128xf32>
    %45 = arith.subf %43, %44 : vector<1x128xf32>
    %c1_22 = arith.constant 1 : index
    %c0_23 = arith.constant 0 : index
    %c0_24 = arith.constant 0 : index
    %46 = vector.load %arg2[%c1_22, %c0_23, %c0_24] : memref<11x1x128xf32, #tpu.memory_space<vmem>>, vector<1x1x128xf32>
    %47 = vector.shape_cast %46 : vector<1x1x128xf32> to vector<1x128xf32>
    %cst_25 = arith.constant 9.99999974E-6 : f32
    %48 = vector.broadcast %cst_25 : f32 to vector<1x128xf32>
    %49 = arith.addf %45, %48 : vector<1x128xf32>
    %50 = math.rsqrt %49 : vector<1x128xf32>
    %51 = arith.mulf %47, %50 : vector<1x128xf32>
    %c6 = arith.constant 6 : index
    %c0_26 = arith.constant 0 : index
    %c0_27 = arith.constant 0 : index
    %52 = vector.load %arg2[%c6, %c0_26, %c0_27] : memref<11x1x128xf32, #tpu.memory_space<vmem>>, vector<1x1x128xf32>
    %53 = vector.shape_cast %52 : vector<1x1x128xf32> to vector<1x128xf32>
    %54 = arith.mulf %41, %51 : vector<1x128xf32>
    %55 = arith.subf %53, %54 : vector<1x128xf32>
    %56 = vector.broadcast %51 : vector<1x128xf32> to vector<8x128xf32>
    %57 = arith.mulf %34, %56 : vector<8x128xf32>
    %58 = vector.broadcast %55 : vector<1x128xf32> to vector<8x128xf32>
    %59 = arith.addf %57, %58 : vector<8x128xf32>
    %cst_28 = arith.constant 0.00999999977 : f32
    %60 = vector.broadcast %cst_28 : f32 to vector<8x128xf32>
    %61 = arith.mulf %60, %59 : vector<8x128xf32>
    %62 = arith.maximumf %59, %61 : vector<8x128xf32>
    %c2 = arith.constant 2 : index
    %c0_29 = arith.constant 0 : index
    %c0_30 = arith.constant 0 : index
    %63 = vector.load %arg1[%c2, %c0_29, %c0_30] : memref<6x128x128xf32, #tpu.memory_space<vmem>>, vector<1x128x128xf32>
    %64 = vector.shape_cast %63 : vector<1x128x128xf32> to vector<128x128xf32>
    %cst_31 = arith.constant dense<0.000000e+00> : vector<8x128xf32>
    %65 = tpu.matmul %62, %64, %cst_31 {dimension_numbers = #tpu.dot_dimension_numbers<[1], [0], [0], [1], [0, 0, 1, 1], [], []>, precision = #tpu.contract_precision<fp32>} : vector<8x128xf32>, vector<128x128xf32>, vector<8x128xf32> -> vector<8x128xf32>
    %cst_32 = arith.constant dense<0.000000e+00> : vector<128xf32>
    %66 = vector.multi_reduction <add>, %65, %cst_32 [0] : vector<8x128xf32> to vector<128xf32>
    %67 = vector.shape_cast %66 : vector<128xf32> to vector<1x128xf32>
    %68 = arith.mulf %65, %65 : vector<8x128xf32>
    %cst_33 = arith.constant dense<0.000000e+00> : vector<128xf32>
    %69 = vector.multi_reduction <add>, %68, %cst_33 [0] : vector<8x128xf32> to vector<128xf32>
    %70 = vector.shape_cast %69 : vector<128xf32> to vector<1x128xf32>
    %cst_34 = arith.constant 1.250000e-01 : f32
    %71 = vector.broadcast %cst_34 : f32 to vector<1x128xf32>
    %72 = arith.mulf %67, %71 : vector<1x128xf32>
    %cst_35 = arith.constant 1.250000e-01 : f32
    %73 = vector.broadcast %cst_35 : f32 to vector<1x128xf32>
    %74 = arith.mulf %70, %73 : vector<1x128xf32>
    %75 = arith.mulf %72, %72 : vector<1x128xf32>
    %76 = arith.subf %74, %75 : vector<1x128xf32>
    %c2_36 = arith.constant 2 : index
    %c0_37 = arith.constant 0 : index
    %c0_38 = arith.constant 0 : index
    %77 = vector.load %arg2[%c2_36, %c0_37, %c0_38] : memref<11x1x128xf32, #tpu.memory_space<vmem>>, vector<1x1x128xf32>
    %78 = vector.shape_cast %77 : vector<1x1x128xf32> to vector<1x128xf32>
    %cst_39 = arith.constant 9.99999974E-6 : f32
    %79 = vector.broadcast %cst_39 : f32 to vector<1x128xf32>
    %80 = arith.addf %76, %79 : vector<1x128xf32>
    %81 = math.rsqrt %80 : vector<1x128xf32>
    %82 = arith.mulf %78, %81 : vector<1x128xf32>
    %c7 = arith.constant 7 : index
    %c0_40 = arith.constant 0 : index
    %c0_41 = arith.constant 0 : index
    %83 = vector.load %arg2[%c7, %c0_40, %c0_41] : memref<11x1x128xf32, #tpu.memory_space<vmem>>, vector<1x1x128xf32>
    %84 = vector.shape_cast %83 : vector<1x1x128xf32> to vector<1x128xf32>
    %85 = arith.mulf %72, %82 : vector<1x128xf32>
    %86 = arith.subf %84, %85 : vector<1x128xf32>
    %87 = vector.broadcast %82 : vector<1x128xf32> to vector<8x128xf32>
    %88 = arith.mulf %65, %87 : vector<8x128xf32>
    %89 = vector.broadcast %86 : vector<1x128xf32> to vector<8x128xf32>
    %90 = arith.addf %88, %89 : vector<8x128xf32>
    %cst_42 = arith.constant 0.00999999977 : f32
    %91 = vector.broadcast %cst_42 : f32 to vector<8x128xf32>
    %92 = arith.mulf %91, %90 : vector<8x128xf32>
    %93 = arith.maximumf %90, %92 : vector<8x128xf32>
    %c3 = arith.constant 3 : index
    %c0_43 = arith.constant 0 : index
    %c0_44 = arith.constant 0 : index
    %94 = vector.load %arg1[%c3, %c0_43, %c0_44] : memref<6x128x128xf32, #tpu.memory_space<vmem>>, vector<1x128x128xf32>
    %95 = vector.shape_cast %94 : vector<1x128x128xf32> to vector<128x128xf32>
    %cst_45 = arith.constant dense<0.000000e+00> : vector<8x128xf32>
    %96 = tpu.matmul %93, %95, %cst_45 {dimension_numbers = #tpu.dot_dimension_numbers<[1], [0], [0], [1], [0, 0, 1, 1], [], []>, precision = #tpu.contract_precision<fp32>} : vector<8x128xf32>, vector<128x128xf32>, vector<8x128xf32> -> vector<8x128xf32>
    %cst_46 = arith.constant dense<0.000000e+00> : vector<128xf32>
    %97 = vector.multi_reduction <add>, %96, %cst_46 [0] : vector<8x128xf32> to vector<128xf32>
    %98 = vector.shape_cast %97 : vector<128xf32> to vector<1x128xf32>
    %99 = arith.mulf %96, %96 : vector<8x128xf32>
    %cst_47 = arith.constant dense<0.000000e+00> : vector<128xf32>
    %100 = vector.multi_reduction <add>, %99, %cst_47 [0] : vector<8x128xf32> to vector<128xf32>
    %101 = vector.shape_cast %100 : vector<128xf32> to vector<1x128xf32>
    %cst_48 = arith.constant 1.250000e-01 : f32
    %102 = vector.broadcast %cst_48 : f32 to vector<1x128xf32>
    %103 = arith.mulf %98, %102 : vector<1x128xf32>
    %cst_49 = arith.constant 1.250000e-01 : f32
    %104 = vector.broadcast %cst_49 : f32 to vector<1x128xf32>
    %105 = arith.mulf %101, %104 : vector<1x128xf32>
    %106 = arith.mulf %103, %103 : vector<1x128xf32>
    %107 = arith.subf %105, %106 : vector<1x128xf32>
    %c3_50 = arith.constant 3 : index
    %c0_51 = arith.constant 0 : index
    %c0_52 = arith.constant 0 : index
    %108 = vector.load %arg2[%c3_50, %c0_51, %c0_52] : memref<11x1x128xf32, #tpu.memory_space<vmem>>, vector<1x1x128xf32>
    %109 = vector.shape_cast %108 : vector<1x1x128xf32> to vector<1x128xf32>
    %cst_53 = arith.constant 9.99999974E-6 : f32
    %110 = vector.broadcast %cst_53 : f32 to vector<1x128xf32>
    %111 = arith.addf %107, %110 : vector<1x128xf32>
    %112 = math.rsqrt %111 : vector<1x128xf32>
    %113 = arith.mulf %109, %112 : vector<1x128xf32>
    %c8 = arith.constant 8 : index
    %c0_54 = arith.constant 0 : index
    %c0_55 = arith.constant 0 : index
    %114 = vector.load %arg2[%c8, %c0_54, %c0_55] : memref<11x1x128xf32, #tpu.memory_space<vmem>>, vector<1x1x128xf32>
    %115 = vector.shape_cast %114 : vector<1x1x128xf32> to vector<1x128xf32>
    %116 = arith.mulf %103, %113 : vector<1x128xf32>
    %117 = arith.subf %115, %116 : vector<1x128xf32>
    %118 = vector.broadcast %113 : vector<1x128xf32> to vector<8x128xf32>
    %119 = arith.mulf %96, %118 : vector<8x128xf32>
    %120 = vector.broadcast %117 : vector<1x128xf32> to vector<8x128xf32>
    %121 = arith.addf %119, %120 : vector<8x128xf32>
    %cst_56 = arith.constant 0.00999999977 : f32
    %122 = vector.broadcast %cst_56 : f32 to vector<8x128xf32>
    %123 = arith.mulf %122, %121 : vector<8x128xf32>
    %124 = arith.maximumf %121, %123 : vector<8x128xf32>
    %c4 = arith.constant 4 : index
    %c0_57 = arith.constant 0 : index
    %c0_58 = arith.constant 0 : index
    %125 = vector.load %arg1[%c4, %c0_57, %c0_58] : memref<6x128x128xf32, #tpu.memory_space<vmem>>, vector<1x128x128xf32>
    %126 = vector.shape_cast %125 : vector<1x128x128xf32> to vector<128x128xf32>
    %cst_59 = arith.constant dense<0.000000e+00> : vector<8x128xf32>
    %127 = tpu.matmul %124, %126, %cst_59 {dimension_numbers = #tpu.dot_dimension_numbers<[1], [0], [0], [1], [0, 0, 1, 1], [], []>, precision = #tpu.contract_precision<fp32>} : vector<8x128xf32>, vector<128x128xf32>, vector<8x128xf32> -> vector<8x128xf32>
    %cst_60 = arith.constant dense<0.000000e+00> : vector<128xf32>
    %128 = vector.multi_reduction <add>, %127, %cst_60 [0] : vector<8x128xf32> to vector<128xf32>
    %129 = vector.shape_cast %128 : vector<128xf32> to vector<1x128xf32>
    %130 = arith.mulf %127, %127 : vector<8x128xf32>
    %cst_61 = arith.constant dense<0.000000e+00> : vector<128xf32>
    %131 = vector.multi_reduction <add>, %130, %cst_61 [0] : vector<8x128xf32> to vector<128xf32>
    %132 = vector.shape_cast %131 : vector<128xf32> to vector<1x128xf32>
    %cst_62 = arith.constant 1.250000e-01 : f32
    %133 = vector.broadcast %cst_62 : f32 to vector<1x128xf32>
    %134 = arith.mulf %129, %133 : vector<1x128xf32>
    %cst_63 = arith.constant 1.250000e-01 : f32
    %135 = vector.broadcast %cst_63 : f32 to vector<1x128xf32>
    %136 = arith.mulf %132, %135 : vector<1x128xf32>
    %137 = arith.mulf %134, %134 : vector<1x128xf32>
    %138 = arith.subf %136, %137 : vector<1x128xf32>
    %c4_64 = arith.constant 4 : index
    %c0_65 = arith.constant 0 : index
    %c0_66 = arith.constant 0 : index
    %139 = vector.load %arg2[%c4_64, %c0_65, %c0_66] : memref<11x1x128xf32, #tpu.memory_space<vmem>>, vector<1x1x128xf32>
    %140 = vector.shape_cast %139 : vector<1x1x128xf32> to vector<1x128xf32>
    %cst_67 = arith.constant 9.99999974E-6 : f32
    %141 = vector.broadcast %cst_67 : f32 to vector<1x128xf32>
    %142 = arith.addf %138, %141 : vector<1x128xf32>
    %143 = math.rsqrt %142 : vector<1x128xf32>
    %144 = arith.mulf %140, %143 : vector<1x128xf32>
    %c9 = arith.constant 9 : index
    %c0_68 = arith.constant 0 : index
    %c0_69 = arith.constant 0 : index
    %145 = vector.load %arg2[%c9, %c0_68, %c0_69] : memref<11x1x128xf32, #tpu.memory_space<vmem>>, vector<1x1x128xf32>
    %146 = vector.shape_cast %145 : vector<1x1x128xf32> to vector<1x128xf32>
    %147 = arith.mulf %134, %144 : vector<1x128xf32>
    %148 = arith.subf %146, %147 : vector<1x128xf32>
    %149 = vector.broadcast %144 : vector<1x128xf32> to vector<8x128xf32>
    %150 = arith.mulf %127, %149 : vector<8x128xf32>
    %151 = vector.broadcast %148 : vector<1x128xf32> to vector<8x128xf32>
    %152 = arith.addf %150, %151 : vector<8x128xf32>
    %cst_70 = arith.constant 0.00999999977 : f32
    %153 = vector.broadcast %cst_70 : f32 to vector<8x128xf32>
    %154 = arith.mulf %153, %152 : vector<8x128xf32>
    %155 = arith.maximumf %152, %154 : vector<8x128xf32>
    %c5_71 = arith.constant 5 : index
    %c0_72 = arith.constant 0 : index
    %c0_73 = arith.constant 0 : index
    %156 = vector.load %arg1[%c5_71, %c0_72, %c0_73] : memref<6x128x128xf32, #tpu.memory_space<vmem>>, vector<1x128x128xf32>
    %157 = vector.shape_cast %156 : vector<1x128x128xf32> to vector<128x128xf32>
    %cst_74 = arith.constant dense<0.000000e+00> : vector<8x128xf32>
    %158 = tpu.matmul %155, %157, %cst_74 {dimension_numbers = #tpu.dot_dimension_numbers<[1], [0], [0], [1], [0, 0, 1, 1], [], []>, precision = #tpu.contract_precision<fp32>} : vector<8x128xf32>, vector<128x128xf32>, vector<8x128xf32> -> vector<8x128xf32>
    %c10 = arith.constant 10 : index
    %c0_75 = arith.constant 0 : index
    %c0_76 = arith.constant 0 : index
    %159 = vector.load %arg2[%c10, %c0_75, %c0_76] : memref<11x1x128xf32, #tpu.memory_space<vmem>>, vector<1x1x128xf32>
    %160 = vector.shape_cast %159 : vector<1x1x128xf32> to vector<1x128xf32>
    %161 = vector.broadcast %160 : vector<1x128xf32> to vector<8x128xf32>
    %162 = arith.addf %158, %161 : vector<8x128xf32>
    %c0_77 = arith.constant 0 : index
    %c0_78 = arith.constant 0 : index
    %163 = vector.load %arg3[%c0_77, %c0_78] : memref<8x128xf32, #tpu.memory_space<vmem>>, vector<8x128xf32>
    tpu.vector_store %arg3[%c0_77, %c0_78], %162 {strides = array<i32>} : memref<8x128xf32, #tpu.memory_space<vmem>>, vector<8x128xf32>,
    return
  }
}

</mosaic_0001>

<bundles_post_ra>
// kernel: inv_symmetry_forward.1
= control target key start
LH: loop header
LB: loop body
LE: loop exit
PB: predicated region body
PF: predicated region fallthrough
CT: control target
= control target key end

     0   :  { %8 = vsyncpa [#allocation3], 0  ;;  %s7047_s12 = smov [#allocation2]   ;;  %s8833_s0 = inlined_call_operand.vmem [shape: f32[8,128], index: 0, kind: input, shape index: {}]   ;;  %s8834_s1 = inlined_call_operand.hbm [shape: f32[6,128,128], index: 1, kind: input, shape index: {}]   ;;  %s8835_s2 = inlined_call_operand.vmem [shape: f32[11,1,128], index: 2, kind: input, shape index: {}]   ;;  %s8836_s3 = inlined_call_operand.vmem [shape: f32[8,128], index: 3, kind: output, shape index: {}]  }
   0x1   :  { %s16_s13 = sshll.u32 %s7047_s12, 4  ;;  %s7023_s16 = scalar_lea.hbm %s8834_s1, 12288  ;;  %s17_s13 = int_to_ptr.vmem [resolvable:$true] %s16_s13 }
   0x2   :  { %p7024_p0 = scmp.ne.s32.totalorder %s8834_s1, %s7023_s16  ;;  %p7027_p1 = scmp.lt.u32.totalorder %s7023_s16, %s8834_s1 }
   0x4   :  { %p7029_p2 = pnand %p7027_p1, %p7024_p0 }
   0x6   :  { %7032 = shalt.err (!%p7029_p2)
}
   0x7   :  { %s7033_s21 = scalar_lea.vmem %s17_s13, 12288  ;;  %p7038_p4 = scmp.lt.s32.totalorder %s17_s13, %s17_s13 }
   0x8   :  { %p7034_p3 = scmp.ne.s32.totalorder %s17_s13, %s7033_s21  ;;  %p7039_p5 = scmp.lt.s32.totalorder %s7033_s21, %s7033_s21 }
   0xa   :  { %p7040_p6 = por %p7039_p5, %p7038_p4 }
   0xc   :  { %p7041_p7 = pnand %p7040_p6, %p7034_p3 }
   0xe   :  { %7044 = shalt.err (!%p7041_p7)
}
   0xf   :  { %s7048_s22 = smov 128   ;;  %s7049_s23 = smov 8  }
  0x10   :  { %22 = dma.hbm_to_vmem [thread:$0]  %s8834_s1, 12288, %s17_s13, [#allocation3], %s7048_s22, %s7048_s22, %s7049_s23  }
  0x11   :  { %7045 = dma.done.wait [#allocation3], 12288  }
  0x12   :  { %7046 = vsyncadd [#allocation3], 4294955008  ;;  %v7050_v0 = vmov 0.0|0.0   ;;  %vm7051_vm0 = vmmov 0   ;;  %v7052_v1 = vmov 0.0   ;;  %v29_v2 = vld [vmem:[#allocation2] sm:$0xff] }
  0x13   :  { %6082 = vmatprep.subr.bf16.mxu0 %v7050_v0  ;;  %4854 = vmatprep.mubr.msk.f32.mxu0 %vm7051_vm0, %v7052_v1  ;;  %v30_v3 = vld [vmem:[#allocation2 + $0x8] sm:$0xff]  ;;  %v31_v4 = vld [vmem:[#allocation2 + $0x10] sm:$0xff]  ;;  %v46_v5 = vand.u32 4294901760, %v29_v2  ;;  %v32_v7 = vld [vmem:[#allocation2 + $0x18] sm:$0xff] }
  0x14   :  { %6226 = vmatprep.subr.bf16.mxu1 %v7050_v0  ;;  %5064 = vmatprep.mubr.msk.f32.mxu1 %vm7051_vm0, %v7052_v1  ;;  %v49_v6 = vand.u32 4294901760, %v30_v3  ;;  %v52_v8 = vand.u32 4294901760, %v31_v4  ;;  %v55_v9 = vand.u32 4294901760, %v32_v7  ;;  %v33_v10 = vld [vmem:[#allocation2 + $0x20] sm:$0xff]  ;;  %v34_v11 = vld [vmem:[#allocation2 + $0x28] sm:$0xff]  ;;  %v35_v16 = vld [vmem:[#allocation2 + $0x30] sm:$0xff] }
  0x15   :  { %v58_v14 = vand.u32 4294901760, %v33_v10  ;;  %v61_v15 = vand.u32 4294901760, %v34_v11  ;;  %v36_v17 = vld [vmem:[#allocation2 + $0x38] sm:$0xff]  ;;  %v64_v19 = vand.u32 4294901760, %v35_v16  ;;  %v37_v21 = vld [vmem:[#allocation2 + $0x40] sm:$0xff]  ;;  %v38_v22 = vld [vmem:[#allocation2 + $0x48] sm:$0xff]  ;;  %v7104_v24 = vsub.f32 %v29_v2, %v46_v5 }
  0x16   :  { %v7091_v12 = vpack.c.bf16 %v49_v6, %v46_v5  ;;  %v7094_v13 = vpack.c.bf16 %v55_v9, %v52_v8  ;;  %v67_v20 = vand.u32 4294901760, %v36_v17  ;;  %v28_v23 = vld [vmem:[%s8833_s0] sm:$0xff]  ;;  %v7106_v25 = vsub.f32 %v30_v3, %v49_v6  ;;  %v39_v29 = vld [vmem:[#allocation2 + $0x50] sm:$0xff]  ;;  %v40_v30 = vld [vmem:[#allocation2 + $0x58] sm:$0xff] }
  0x17   :  { %v7098_v18 = vpack.c.bf16 %v61_v15, %v58_v14  ;;  %v70_v27 = vand.u32 4294901760, %v37_v21  ;;  %v73_v28 = vand.u32 4294901760, %v38_v22  ;;  %v7112_v31 = vand.u32 4294901760, %v28_v23  ;;  %v41_v32 = vld [vmem:[#allocation2 + $0x60] sm:$0xff]  ;;  %v42_v35 = vld [vmem:[#allocation2 + $0x68] sm:$0xff]  ;;  %v43_v36 = vld [vmem:[#allocation2 + $0x70] sm:$0xff] }
  0x18   :  { %6084 = vmatpush3.bf16.msra.mxu0 %v7091_v12  ;;  %v7109_v26 = vpack.c.bf16 %v67_v20, %v64_v19  ;;  %v7114_v33 = vsub.f32 %v31_v4, %v52_v8  ;;  %v76_v34 = vand.u32 4294901760, %v39_v29  ;;  %v44_v37 = vld [vmem:[#allocation2 + $0x78] sm:$0xff]  ;;  %v79_v39 = vand.u32 4294901760, %v40_v30 }
  0x19   :  { %6085 = vmatprep.subr.bf16.mxu0 %v7050_v0  ;;  %v7117_v38 = vpack.c.bf16 %v73_v28, %v70_v27  ;;  %v139_v40 = vand.u32 4294901760, %v7104_v24  ;;  %v146_v41 = vand.u32 4294901760, %v7106_v25  ;;  %v7121_v42 = vsub.f32 %v32_v7, %v55_v9 }
  0x1a   :  { %v7123_v43 = vsub.f32 %v33_v10, %v58_v14  ;;  %v7125_v44 = vsub.f32 %v34_v11, %v61_v15  ;;  %v7129_v45 = vsub.f32 %v28_v23, %v7112_v31  ;;  %v82_v46 = vand.u32 4294901760, %v41_v32 }
  0x1b   :  { %v85_v47 = vand.u32 4294901760, %v42_v35  ;;  %v88_v48 = vand.u32 4294901760, %v43_v36  ;;  %v91_v49 = vand.u32 4294901760, %v44_v37  ;;  %v7131_v50 = vsub.f32 %v35_v16, %v64_v19 }
  0x1c   :  { %6087 = vmatpush3.bf16.msra.mxu0 %v7094_v13  ;;  %v7133_v51 = vsub.f32 %v36_v17, %v67_v20  ;;  %v7135_v52 = vsub.f32 %v37_v21, %v70_v27  ;;  %v153_v53 = vand.u32 4294901760, %v7114_v33  ;;  %v7139_v54 = vsub.f32 %v38_v22, %v73_v28 }
  0x1d   :  { %6088 = vmatprep.subr.bf16.mxu0 %v7050_v0  ;;  %v7141_v55 = vpack.c.bf16 %v79_v39, %v76_v34  ;;  %v140_v56 = vsub.f32 %v7104_v24, %v139_v40  ;;  %v147_v57 = vsub.f32 %v7106_v25, %v146_v41  ;;  %v7146_v58 = vsub.f32 %v39_v29, %v76_v34 }
  0x1e   :  { %v7148_v59 = vsub.f32 %v40_v30, %v79_v39  ;;  %v7150_v60 = vsub.f32 %v41_v32, %v82_v46  ;;  %v128_v61 = vand.u32 4294901760, %v7129_v45  ;;  %v7153_v62 = vpack.c.bf16 %v85_v47, %v82_v46 }
  0x1f   :  { %v7155_v63 = vsub.f32 %v42_v35, %v85_v47  ;;  %v7157_v2 = vpack.c.bf16 %v91_v49, %v88_v48  ;;  %v7159_v3 = vsub.f32 %v43_v36, %v88_v48  ;;  %v7161_v4 = vsub.f32 %v44_v37, %v91_v49 }
  0x20   :  { %6090 = vmatpush3.bf16.msra.mxu0 %v7098_v18  ;;  %v154_v5 = vsub.f32 %v7114_v33, %v153_v53  ;;  %v160_v6 = vand.u32 4294901760, %v7121_v42  ;;  %v167_v7 = vand.u32 4294901760, %v7123_v43  ;;  %v141_v8 = vand.u32 4294901760, %v140_v56 }
  0x21   :  { %6091 = vmatprep.subr.bf16.mxu0 %v7050_v0  ;;  %v148_v9 = vand.u32 4294901760, %v147_v57  ;;  %v174_v10 = vand.u32 4294901760, %v7125_v44  ;;  %v181_v11 = vand.u32 4294901760, %v7131_v50  ;;  %v129_v14 = vsub.f32 %v7129_v45, %v128_v61 }
  0x22   :  { %v188_v15 = vand.u32 4294901760, %v7133_v51  ;;  %v195_v16 = vand.u32 4294901760, %v7135_v52  ;;  %v202_v17 = vand.u32 4294901760, %v7139_v54  ;;  %v209_v19 = vand.u32 4294901760, %v7146_v58 }
  0x23   :  { %v216_v20 = vand.u32 4294901760, %v7148_v59  ;;  %v223_v21 = vand.u32 4294901760, %v7150_v60  ;;  %v230_v22 = vand.u32 4294901760, %v7155_v63  ;;  %v237_v23 = vand.u32 4294901760, %v7159_v3 }
  0x24   :  { %6093 = vmatpush3.bf16.msra.mxu0 %v7109_v26  ;;  %v244_v27 = vand.u32 4294901760, %v7161_v4  ;;  %v7182_v28 = vpack.c.bf16 %v146_v41, %v139_v40  ;;  %v7184_v29 = vpack.c.bf16 %v160_v6, %v153_v53  ;;  %v161_v30 = vsub.f32 %v7121_v42, %v160_v6 }
  0x25   :  { %6094 = vmatprep.subr.bf16.mxu0 %v7050_v0  ;;  %v7188_v32 = vpack.c.bf16 %v174_v10, %v167_v7  ;;  %v7190_v34 = vpack.c.bf16 %v188_v15, %v181_v11  ;;  %v7192_v35 = vpack.c.bf16 %v202_v17, %v195_v16  ;;  %v7195_v36 = vpack.c.bf16 %v216_v20, %v209_v19 }
  0x26   :  { %v7197_v37 = vpack.c.bf16 %v230_v22, %v223_v21  ;;  %v7199_v39 = vpack.c.bf16 %v244_v27, %v237_v23  ;;  %v130_v40 = vand.u32 4294901760, %v129_v14  ;;  %v155_v41 = vand.u32 4294901760, %v154_v5 }
  0x27   :  { %v6107_v46 = vpack.c.bf16 %v148_v9, %v141_v8  ;;  %v162_v47 = vand.u32 4294901760, %v161_v30  ;;  %v168_v48 = vsub.f32 %v7123_v43, %v167_v7  ;;  %v175_v49 = vsub.f32 %v7125_v44, %v174_v10 }
  0x28   :  { %6096 = vmatpush3.bf16.msra.mxu0 %v7117_v38  ;;  %v182_v53 = vsub.f32 %v7131_v50, %v181_v11  ;;  %v189_v14 = vsub.f32 %v7133_v51, %v188_v15  ;;  %v196_v5 = vsub.f32 %v7135_v52, %v195_v16  ;;  %v203_v10 = vsub.f32 %v7139_v54, %v202_v17 }
  0x29   :  { %6097 = vmatprep.subr.bf16.mxu0 %v7050_v0  ;;  %v6110_v56 = vpack.c.bf16 %v162_v47, %v155_v41  ;;  %v169_v57 = vand.u32 4294901760, %v168_v48  ;;  %v176_v6 = vand.u32 4294901760, %v175_v49  ;;  %v210_v15 = vsub.f32 %v7146_v58, %v209_v19 }
  0x2a   :  { %v183_v8 = vand.u32 4294901760, %v182_v53  ;;  %v190_v9 = vand.u32 4294901760, %v189_v14  ;;  %v197_v11 = vand.u32 4294901760, %v196_v5  ;;  %v217_v41 = vsub.f32 %v7148_v59, %v216_v20  ;;  %v740_v5 = vld [vmem:[#allocation2 + $0xe0] sm:$0xff] }
  0x2b   :  { %v6113_v7 = vpack.c.bf16 %v176_v6, %v169_v57  ;;  %v224_v16 = vsub.f32 %v7150_v60, %v223_v21  ;;  %v211_v47 = vand.u32 4294901760, %v210_v15  ;;  %v231_v17 = vsub.f32 %v7155_v63, %v230_v22  ;;  %v742_v15 = vld [vmem:[#allocation2 + $0xf0] sm:$0xff] }
  0x2c   :  { %6099 = vmatpush3.bf16.msra.mxu0 %v7141_v55  ;;  %v6116_v30 = vpack.c.bf16 %v190_v9, %v183_v8  ;;  %v218_v48 = vand.u32 4294901760, %v217_v41  ;;  %v238_v19 = vsub.f32 %v7159_v3, %v237_v23  ;;  %v245_v20 = vsub.f32 %v7161_v4, %v244_v27 }
  0x2d   :  { %6100 = vmatprep.subr.bf16.mxu0 %v7050_v0  ;;  %v225_v49 = vand.u32 4294901760, %v224_v16  ;;  %v6131_v14 = vpack.c.bf16 %v7106_v25, %v7104_v24  ;;  %v6134_v23 = vpack.c.bf16 %v7121_v42, %v7114_v33  ;;  %v6137_v27 = vpack.c.bf16 %v7125_v44, %v7123_v43  ;;  %v730_v44 = vld [vmem:[#allocation2 + $0x90] sm:$0xff] }
  0x2e   :  { %v6122_v53 = vpack.c.bf16 %v218_v48, %v211_v47  ;;  %v239_v57 = vand.u32 4294901760, %v238_v19  ;;  %v246_v6 = vand.u32 4294901760, %v245_v20  ;;  %v6140_v24 = vpack.c.bf16 %v7133_v51, %v7131_v50  ;;  %v743_v48 = vld [vmem:[#allocation2 + $0xf8] sm:$0xff] }
  0x2f   :  { %v6143_v25 = vpack.c.bf16 %v7139_v54, %v7135_v52  ;;  %v6146_v33 = vpack.c.bf16 %v7148_v59, %v7146_v58  ;;  %v6149_v42 = vpack.c.bf16 %v7155_v63, %v7150_v60  ;;  %v6152_v43 = vpack.c.bf16 %v7161_v4, %v7159_v3  ;;  %v733_v54 = vld [vmem:[#allocation2 + $0xa8] sm:$0xff]  ;;  %v734_v60 = vld [vmem:[#allocation2 + $0xb0] sm:$0xff]  ;;  %v736_v3 = vld [vmem:[#allocation2 + $0xc0] sm:$0xff] }
  0x30   :  { %6102 = vmatpush3.bf16.msra.mxu0 %v7153_v62  ;;  %v6128_v22 = vpack.c.bf16 %v246_v6, %v239_v57  ;;  %v751_v50 = vand.u32 4294901760, %v730_v44  ;;  %v760_v58 = vand.u32 4294901760, %v733_v54  ;;  %v737_v4 = vld [vmem:[#allocation2 + $0xc8] sm:$0xff]  ;;  %v781_v8 = vand.u32 4294901760, %v740_v5 }
  0x31   :  { %6103 = vmatprep.subr.bf16.mxu0 %v7050_v0  ;;  %v787_v57 = vand.u32 4294901760, %v742_v15  ;;  %v790_v6 = vand.u32 4294901760, %v743_v48 }
  0x32   :  { %v7347_v16 = vsub.f32 %v733_v54, %v760_v58  ;;  %v7363_v20 = vsub.f32 %v740_v5, %v781_v8 }
  0x34   :  { %6105 = vmatpush3.bf16.msra.mxu0 %v7157_v2 }
  0x35   :  { %6106 = vmatprep.subr.bf16.mxu0 %v7050_v0 }
  0x37   :  { %4855 = vmatmul.mubr.f32.vlgmr.msra.gmra.mrb[0].mxu0 %v130_v40  ;;  %v204_v40 = vand.u32 4294901760, %v203_v10 }
  0x38   :  { %6108 = vmatpush3.bf16.msra.mxu0 %v6107_v46  ;;  %4889 = vmatprep.mubr.msk.f32.mxu0 %vm7051_vm0, %v7052_v1 }
  0x39   :  { %6109 = vmatprep.subr.bf16.mxu0 %v7050_v0  ;;  %v6119_v46 = vpack.c.bf16 %v204_v40, %v197_v11 }
  0x3c   :  { %6111 = vmatpush3.bf16.msra.mxu0 %v6110_v56  ;;  %v232_v56 = vand.u32 4294901760, %v231_v17 }
  0x3d   :  { %6112 = vmatprep.subr.bf16.mxu0 %v7050_v0 }
  0x3e   :  { %v6125_v21 = vpack.c.bf16 %v232_v56, %v225_v49 }
  0x40   :  { %6114 = vmatpush3.bf16.msra.mxu0 %v6113_v7  ;;  %v741_v7 = vld [vmem:[#allocation2 + $0xe8] sm:$0xff] }
  0x41   :  { %6115 = vmatprep.subr.bf16.mxu0 %v7050_v0  ;;  %v784_v9 = vand.u32 4294901760, %v741_v7 }
  0x43   :  { %v7361_v19 = vpack.c.bf16 %v784_v9, %v781_v8 }
  0x44   :  { %6117 = vmatpush3.bf16.msra.mxu0 %v6116_v30  ;;  %v7341_v30 = vsub.f32 %v730_v44, %v751_v50 }
  0x45   :  { %6118 = vmatprep.subr.bf16.mxu0 %v7050_v0 }
  0x48   :  { %6120 = vmatpush3.bf16.msra.mxu0 %v6119_v46 }
  0x49   :  { %6121 = vmatprep.subr.bf16.mxu0 %v7050_v0 }
  0x4c   :  { %6123 = vmatpush3.bf16.msra.mxu0 %v6122_v53 }
  0x4d   :  { %6124 = vmatprep.subr.bf16.mxu0 %v7050_v0 }
  0x50   :  { %6126 = vmatpush3.bf16.msra.mxu0 %v6125_v21  ;;  %v7365_v21 = vsub.f32 %v741_v7, %v784_v9 }
  0x51   :  { %6127 = vmatprep.subr.bf16.mxu0 %v7050_v0 }
  0x54   :  { %6129 = vmatpush3.bf16.msra.mxu0 %v6128_v22 }
  0x55   :  { %6130 = vmatprep.subr.bf16.mxu0 %v7050_v0 }
  0x57   :  { %4890 = vmatmul.mubr.f32.vlgmr.msra.gmra.mrb[0].mxu0 %v7112_v31 }
  0x58   :  { %6132 = vmatpush3.bf16.msra.mxu0 %v6131_v14  ;;  %4924 = vmatprep.mubr.msk.f32.mxu0 %vm7051_vm0, %v7052_v1 }
  0x59   :  { %6133 = vmatprep.subr.bf16.mxu0 %v7050_v0 }
  0x5c   :  { %6135 = vmatpush3.bf16.msra.mxu0 %v6134_v23  ;;  %v7370_v23 = vsub.f32 %v742_v15, %v787_v57 }
  0x5d   :  { %6136 = vmatprep.subr.bf16.mxu0 %v7050_v0 }
  0x60   :  { %6138 = vmatpush3.bf16.msra.mxu0 %v6137_v27  ;;  %v7373_v27 = vpack.c.bf16 %v790_v6, %v787_v57 }
  0x61   :  { %6139 = vmatprep.subr.bf16.mxu0 %v7050_v0 }
  0x64   :  { %6141 = vmatpush3.bf16.msra.mxu0 %v6140_v24  ;;  %v7375_v24 = vsub.f32 %v743_v48, %v790_v6 }
  0x65   :  { %6142 = vmatprep.subr.bf16.mxu0 %v7050_v0 }
  0x68   :  { %6144 = vmatpush3.bf16.msra.mxu0 %v6143_v25 }
  0x69   :  { %6145 = vmatprep.subr.bf16.mxu0 %v7050_v0 }
  0x6c   :  { %6147 = vmatpush3.bf16.msra.mxu0 %v6146_v33 }
  0x6d   :  { %6148 = vmatprep.subr.bf16.mxu0 %v7050_v0 }
  0x70   :  { %6150 = vmatpush3.bf16.msra.mxu0 %v6149_v42  ;;  %v8850_v42 = vand.u32 4294901760, %v7341_v30 }
  0x71   :  { %6151 = vmatprep.subr.bf16.mxu0 %v7050_v0 }
  0x74   :  { %6153 = vmatpush3.bf16.msra.mxu0 %v6152_v43 }
  0x75   :  { %6154 = vmatprep.subr.bf16.mxu0 %v7050_v0 }
  0x77   :  { %4925 = vmatmul.mubr.f32.vlgmr.msra.gmra.mrb[0].mxu0 %v7129_v45  ;;  %v731_v45 = vld [vmem:[#allocation2 + $0x98] sm:$0xff] }
  0x78   :  { %6156 = vmatpush3.bf16.msra.mxu0 %v7091_v12  ;;  %4959 = vmatprep.mubr.msk.f32.mxu0 %vm7051_vm0, %v7052_v1  ;;  %v754_v51 = vand.u32 4294901760, %v731_v45 }
  0x79   :  { %6157 = vmatprep.subr.bf16.mxu0 %v7050_v0 }
  0x7a   :  { %v7317_v52 = vpack.c.bf16 %v754_v51, %v751_v50  ;;  %v7343_v40 = vsub.f32 %v731_v45, %v754_v51 }
  0x7c   :  { %6159 = vmatpush3.bf16.msra.mxu0 %v7094_v13  ;;  %v8849_v43 = vand.u32 4294901760, %v7343_v40 }
  0x7d   :  { %6160 = vmatprep.subr.bf16.mxu0 %v7050_v0 }
  0x80   :  { %6162 = vmatpush3.bf16.msra.mxu0 %v7098_v18 }
  0x81   :  { %6163 = vmatprep.subr.bf16.mxu0 %v7050_v0 }
  0x84   :  { %6165 = vmatpush3.bf16.msra.mxu0 %v7109_v26 }
  0x85   :  { %6166 = vmatprep.subr.bf16.mxu0 %v7050_v0 }
  0x88   :  { %6168 = vmatpush3.bf16.msra.mxu0 %v7117_v38 }
  0x89   :  { %6169 = vmatprep.subr.bf16.mxu0 %v7050_v0 }
  0x8c   :  { %6171 = vmatpush3.bf16.msra.mxu0 %v7141_v55 }
  0x8d   :  { %6172 = vmatprep.subr.bf16.mxu0 %v7050_v0 }
  0x90   :  { %6174 = vmatpush3.bf16.msra.mxu0 %v7153_v62 }
  0x91   :  { %6175 = vmatprep.subr.bf16.mxu0 %v7050_v0 }
  0x94   :  { %6177 = vmatpush3.bf16.msra.mxu0 %v7157_v2 }
  0x95   :  { %6178 = vmatprep.subr.bf16.mxu0 %v7050_v0 }
  0x97   :  { %4960 = vmatmul.mubr.f32.vlgmr.msra.gmra.mrb[0].mxu0 %v128_v61  ;;  %v735_v61 = vld [vmem:[#allocation2 + $0xb8] sm:$0xff] }
  0x98   :  { %6180 = vmatpush3.bf16.msra.mxu0 %v7182_v28  ;;  %4994 = vmatprep.mubr.msk.f32.mxu0 %vm7051_vm0, %v7052_v1  ;;  %v766_v63 = vand.u32 4294901760, %v735_v61  ;;  %v769_v28 = vand.u32 4294901760, %v736_v3 }
  0x99   :  { %6181 = vmatprep.subr.bf16.mxu0 %v7050_v0 }
  0x9a   :  { %v7351_v47 = vsub.f32 %v735_v61, %v766_v63  ;;  %v7353_v17 = vsub.f32 %v736_v3, %v769_v28 }
  0x9c   :  { %6183 = vmatpush3.bf16.msra.mxu0 %v7184_v29  ;;  %v772_v29 = vand.u32 4294901760, %v737_v4 }
  0x9d   :  { %6184 = vmatprep.subr.bf16.mxu0 %v7050_v0 }
  0x9e   :  { %v7355_v49 = vsub.f32 %v737_v4, %v772_v29 }
  0xa0   :  { %6186 = vmatpush3.bf16.msra.mxu0 %v7188_v32  ;;  %v7329_v32 = vpack.c.bf16 %v772_v29, %v769_v28 }
  0xa1   :  { %6187 = vmatprep.subr.bf16.mxu0 %v7050_v0 }
  0xa4   :  { %6189 = vmatpush3.bf16.msra.mxu0 %v7190_v34  ;;  %v738_v34 = vld [vmem:[#allocation2 + $0xd0] sm:$0xff] }
  0xa5   :  { %6190 = vmatprep.subr.bf16.mxu0 %v7050_v0 }
  0xa8   :  { %6192 = vmatpush3.bf16.msra.mxu0 %v7192_v35  ;;  %v739_v35 = vld [vmem:[#allocation2 + $0xd8] sm:$0xff] }
  0xa9   :  { %6193 = vmatprep.subr.bf16.mxu0 %v7050_v0 }
  0xac   :  { %6195 = vmatpush3.bf16.msra.mxu0 %v7195_v36  ;;  %v775_v36 = vand.u32 4294901760, %v738_v34 }
  0xad   :  { %6196 = vmatprep.subr.bf16.mxu0 %v7050_v0 }
  0xae   :  { %v7357_v53 = vsub.f32 %v738_v34, %v775_v36 }
  0xb0   :  { %6198 = vmatpush3.bf16.msra.mxu0 %v7197_v37  ;;  %v778_v37 = vand.u32 4294901760, %v739_v35  ;;  %v8842_v15 = vand.u32 4294901760, %v7357_v53 }
  0xb1   :  { %6199 = vmatprep.subr.bf16.mxu0 %v7050_v0 }
  0xb2   :  { %v7359_v56 = vsub.f32 %v739_v35, %v778_v37  ;;  %v8844_v35 = vand.u32 4294901760, %v7353_v17  ;;  %v909_v6 = vsub.f32 %v7357_v53, %v8842_v15 }
  0xb4   :  { %6201 = vmatpush3.bf16.msra.mxu0 %v7199_v39  ;;  %v7333_v39 = vpack.c.bf16 %v778_v37, %v775_v36  ;;  %v8843_v36 = vand.u32 4294901760, %v7355_v49  ;;  %v895_v5 = vsub.f32 %v7353_v17, %v8844_v35  ;;  %v8841_v48 = vand.u32 4294901760, %v7359_v56 }
  0xb5   :  { %6202 = vmatprep.subr.bf16.mxu0 %v7050_v0 }
  0xb6   :  { %v902_v7 = vsub.f32 %v7355_v49, %v8843_v36  ;;  %v896_v8 = vand.u32 4294901760, %v895_v5 }
  0xb7   :  { %4995 = vmatmul.mubr.f32.vlgmr.msra.gmra.mrb[0].mxu0 %v7112_v31 }
  0xb8   :  { %6204 = vmatpush3.bf16.msra.mxu0 %v7091_v12  ;;  %5029 = vmatprep.mubr.msk.f32.mxu0 %vm7051_vm0, %v7052_v1  ;;  %v728_v12 = vld [vmem:[#allocation2 + $0x80] sm:$0xff]  ;;  %v903_v9 = vand.u32 4294901760, %v902_v7 }
  0xb9   :  { %6205 = vmatprep.subr.bf16.mxu0 %v7050_v0 }
  0xba   :  { %v7427_v57 = vpack.c.bf16 %v903_v9, %v896_v8  ;;  %v6278_v9 = vpack.c.bf16 %v7343_v40, %v7341_v30 }
  0xbc   :  { %6207 = vmatpush3.bf16.msra.mxu0 %v7094_v13  ;;  %v729_v13 = vld [vmem:[#allocation2 + $0x88] sm:$0xff] }
  0xbd   :  { %6208 = vmatprep.subr.bf16.mxu0 %v7050_v0 }
  0xc0   :  { %6210 = vmatpush3.bf16.msra.mxu0 %v7098_v18  ;;  %v745_v18 = vand.u32 4294901760, %v728_v12 }
  0xc1   :  { %6211 = vmatprep.subr.bf16.mxu0 %v7050_v0 }
  0xc2   :  { %v7337_v10 = vsub.f32 %v728_v12, %v745_v18 }
  0xc4   :  { %6213 = vmatpush3.bf16.msra.mxu0 %v7109_v26  ;;  %v748_v26 = vand.u32 4294901760, %v729_v13  ;;  %v8852_v22 = vand.u32 4294901760, %v7337_v10 }
  0xc5   :  { %6214 = vmatprep.subr.bf16.mxu0 %v7050_v0 }
  0xc6   :  { %v7339_v11 = vsub.f32 %v729_v13, %v748_v26  ;;  %v839_v25 = vsub.f32 %v7337_v10, %v8852_v22 }
  0xc8   :  { %6216 = vmatpush3.bf16.msra.mxu0 %v7117_v38  ;;  %v7313_v38 = vpack.c.bf16 %v748_v26, %v745_v18  ;;  %v8851_v14 = vand.u32 4294901760, %v7339_v11  ;;  %v840_v12 = vand.u32 4294901760, %v839_v25  ;;  %v853_v18 = vsub.f32 %v7341_v30, %v8850_v42 }
  0xc9   :  { %6217 = vmatprep.subr.bf16.mxu0 %v7050_v0  ;;  %v860_v26 = vsub.f32 %v7343_v40, %v8849_v43  ;;  %v916_v25 = vsub.f32 %v7359_v56, %v8841_v48  ;;  %v6275_v8 = vpack.c.bf16 %v7339_v11, %v7337_v10 }
  0xca   :  { %6228 = vmatpush3.bf16.msra.mxu1 %v7313_v38  ;;  %v846_v33 = vsub.f32 %v7339_v11, %v8851_v14  ;;  %v854_v45 = vand.u32 4294901760, %v853_v18  ;;  %v8839_v18 = vand.u32 4294901760, %v7365_v21  ;;  %v712_v14 = vlaneseq }
  0xcb   :  { %6229 = vmatprep.subr.bf16.mxu1 %v7050_v0  ;;  %v861_v50 = vand.u32 4294901760, %v860_v26 }
  0xcc   :  { %6219 = vmatpush3.bf16.msra.mxu0 %v7141_v55  ;;  %v847_v13 = vand.u32 4294901760, %v846_v33  ;;  %v910_v33 = vand.u32 4294901760, %v909_v6  ;;  %v713_v22 = vshrl.u32 %v712_v14, 7 }
  0xcd   :  { %6220 = vmatprep.subr.bf16.mxu0 %v7050_v0  ;;  %v7397_v54 = vpack.c.bf16 %v861_v50, %v854_v45  ;;  %v930_v50 = vsub.f32 %v7365_v21, %v8839_v18 }
  0xce   :  { %6231 = vmatpush3.bf16.msra.mxu1 %v7317_v52  ;;  %v7393_v44 = vpack.c.bf16 %v847_v13, %v840_v12  ;;  %v917_v12 = vand.u32 4294901760, %v916_v25  ;;  %v8840_v13 = vand.u32 4294901760, %v7363_v20 }
  0xcf   :  { %6232 = vmatprep.subr.bf16.mxu1 %v7050_v0 }
  0xd0   :  { %6222 = vmatpush3.bf16.msra.mxu0 %v7153_v62  ;;  %v763_v62 = vand.u32 4294901760, %v734_v60  ;;  %v7437_v26 = vpack.c.bf16 %v917_v12, %v910_v33  ;;  %v923_v45 = vsub.f32 %v7363_v20, %v8840_v13  ;;  %v6287_v33 = vpack.c.bf16 %v7355_v49, %v7353_v17 }
  0xd1   :  { %6223 = vmatprep.subr.bf16.mxu0 %v7050_v0  ;;  %v6290_v12 = vpack.c.bf16 %v7359_v56, %v7357_v53 }
  0xd2   :  { %v7349_v46 = vsub.f32 %v734_v60, %v763_v62 }
  0xd4   :  { %6225 = vmatpush3.bf16.msra.mxu0 %v7157_v2  ;;  %v7325_v2 = vpack.c.bf16 %v766_v63, %v763_v62  ;;  %v8846_v62 = vand.u32 4294901760, %v7349_v46  ;;  %v8845_v63 = vand.u32 4294901760, %v7351_v47  ;;  %v6284_v25 = vpack.c.bf16 %v7351_v47, %v7349_v46 }
  0xd5   :  { %6370 = vmatprep.subr.bf16.mxu0 %v7050_v0 }
  0xd6   :  { %v881_v4 = vsub.f32 %v7349_v46, %v8846_v62  ;;  %v888_v28 = vsub.f32 %v7351_v47, %v8845_v63 }
  0xd7   :  { %5030 = vmatmul.mubr.f32.vlgmr.msra.gmra.mrb[0].mxu0 %v7112_v31  ;;  %v732_v31 = vld [vmem:[#allocation2 + $0xa0] sm:$0xff] }
  0xd8   :  { %5274 = vmatprep.mubr.msk.f32.mxu0 %vm7051_vm0, %v7052_v1  ;;  %v757_v55 = vand.u32 4294901760, %v732_v31  ;;  %v882_v29 = vand.u32 4294901760, %v881_v4  ;;  %v889_v34 = vand.u32 4294901760, %v888_v28 }
  0xda   :  { %v7321_v59 = vpack.c.bf16 %v760_v58, %v757_v55  ;;  %v7345_v41 = vsub.f32 %v732_v31, %v757_v55  ;;  %v8847_v31 = vand.u32 4294901760, %v7347_v16  ;;  %v7417_v37 = vpack.c.bf16 %v889_v34, %v882_v29 }
  0xdc   :  { %6234 = vmatpush3.bf16.msra.mxu1 %v7321_v59  ;;  %v8848_v51 = vand.u32 4294901760, %v7345_v41  ;;  %v874_v58 = vsub.f32 %v7347_v16, %v8847_v31  ;;  %v6281_v6 = vpack.c.bf16 %v7347_v16, %v7345_v41 }
  0xdd   :  { %6235 = vmatprep.subr.bf16.mxu1 %v7050_v0 }
  0xde   :  { %v867_v55 = vsub.f32 %v7345_v41, %v8848_v51  ;;  %v875_v61 = vand.u32 4294901760, %v874_v58  ;;  %v931_v58 = vand.u32 4294901760, %v930_v50  ;;  %v6296_v50 = vpack.c.bf16 %v7375_v24, %v7370_v23 }
  0xe0   :  { %6237 = vmatpush3.bf16.msra.mxu1 %v7325_v2  ;;  %v868_v60 = vand.u32 4294901760, %v867_v55  ;;  %v924_v55 = vand.u32 4294901760, %v923_v45  ;;  %v6293_v45 = vpack.c.bf16 %v7365_v21, %v7363_v20 }
  0xe1   :  { %6238 = vmatprep.subr.bf16.mxu1 %v7050_v0 }
  0xe2   :  { %v7407_v3 = vpack.c.bf16 %v875_v61, %v868_v60  ;;  %v8838_v60 = vand.u32 4294901760, %v7370_v23  ;;  %v8837_v61 = vand.u32 4294901760, %v7375_v24  ;;  %v7447_v4 = vpack.c.bf16 %v931_v58, %v924_v55 }
  0xe4   :  { %6240 = vmatpush3.bf16.msra.mxu1 %v7329_v32  ;;  %v937_v28 = vsub.f32 %v7370_v23, %v8838_v60  ;;  %v944_v29 = vsub.f32 %v7375_v24, %v8837_v61 }
  0xe5   :  { %6241 = vmatprep.subr.bf16.mxu1 %v7050_v0 }
  0xe6   :  { %v938_v34 = vand.u32 4294901760, %v937_v28  ;;  %v945_v5 = vand.u32 4294901760, %v944_v29 }
  0xe8   :  { %6243 = vmatpush3.bf16.msra.mxu1 %v7333_v39  ;;  %v7455_v7 = vpack.c.bf16 %v945_v5, %v938_v34 }
  0xe9   :  { %6244 = vmatprep.subr.bf16.mxu1 %v7050_v0 }
  0xec   :  { %6246 = vmatpush3.bf16.msra.mxu1 %v7361_v19 }
  0xed   :  { %6247 = vmatprep.subr.bf16.mxu1 %v7050_v0 }
  0xf0   :  { %6249 = vmatpush3.bf16.msra.mxu1 %v7373_v27 }
  0xf1   :  { %6250 = vmatprep.subr.bf16.mxu1 %v7050_v0 }
 0x1aa   :  { %v682_v55 = vpop.f32.mrb[0].mxu0 }
 0x1ab   :  { %v686_v58 = vrot.slane %v682_v55, 4  ;;  %v692_v28 = vmul.f32 %v682_v55, %v682_v55  ;;  %v5031_v29 = vpop.f32.mrb[1].mxu0 }
 0x1ad   :  { %v687_v34 = vadd.f32 %v686_v58, %v682_v55  ;;  %v693_v5 = vrot.slane %v692_v28, 4  ;;  %v703_v58 = vld [vmem:[%s8835_s2] sm:$0x1] }
 0x1af   :  { %v688_v61 = vrot.slane %v687_v34, 2  ;;  %v694_v60 = vadd.f32 %v693_v5, %v692_v28  ;;  %v7476_v28 = vsub.s32 0, %v713_v22 }
 0x1b1   :  { %v689_v18 = vadd.f32 %v688_v61, %v687_v34  ;;  %v695_v13 = vrot.slane %v694_v60, 2 }
 0x1b3   :  { %v690_v48 = vrot.slane %v689_v18, 1  ;;  %v696_v15 = vadd.f32 %v695_v13, %v694_v60 }
 0x1b5   :  { %v691_v36 = vadd.f32 %v690_v48, %v689_v18  ;;  %v697_v35 = vrot.slane %v696_v15, 1 }
 0x1b7   :  { %v698_v63 = vadd.f32 %v697_v35, %v696_v15  ;;  %v699_v62 = vmul.f32 0.125, %v691_v36  ;;  %v4199_v35 = vld [vmem:[%s8835_s2 + $0x5] sm:$0x1] }
 0x1b9   :  { %v700_v31 = vmul.f32 0.125, %v698_v63  ;;  %v701_v51 = vmul.f32 %v699_v62, %v699_v62 }
 0x1bb   :  { %v702_v43 = vsub.f32 %v700_v31, %v701_v51 }
 0x1bd   :  { %v704_v42 = vadd.f32 1e-05, %v702_v43 }
 0x1bf   :  { %7013 = vrsqrt.f32 %v704_v42 }
 0x1c9   :  { %v7014_v61 = vpop.eup %7013 }
 0x1ca   :  { %v706_v29 = vmul.f32 %v7014_v61, %v703_v58  ;;  %v1436_v58 = vld [vmem:[#allocation2 + $0x140] sm:$0xff]  ;;  %v1437_v61 = vld [vmem:[#allocation2 + $0x148] sm:$0xff] }
 0x1cc   :  { %v709_v36 = vmul.f32 %v706_v29, %v699_v62  ;;  %v715_v63 = vrot.slane %v706_v29, %v7476_v28  ;;  %v1469_v29 = vand.u32 4294901760, %v1436_v58 }
 0x1ce   :  { %v710_v51 = vsub.f32 %v4199_v35, %v709_v36  ;;  %v717_v43 = vmul.f32 %v715_v63, %v682_v55  ;;  %v1472_v35 = vand.u32 4294901760, %v1437_v61  ;;  %v1438_v63 = vld [vmem:[#allocation2 + $0x150] sm:$0xff] }
 0x1d0   :  { %v722_v42 = vrot.slane %v710_v51, %v7476_v28  ;;  %v7637_v36 = vpack.c.bf16 %v1472_v35, %v1469_v29  ;;  %v1439_v51 = vld [vmem:[#allocation2 + $0x158] sm:$0xff] }
 0x1d2   :  { %v724_v14 = vadd.f32 %v722_v42, %v717_v43  ;;  %v1475_v43 = vand.u32 4294901760, %v1438_v63  ;;  %v1478_v42 = vand.u32 4294901760, %v1439_v51 }
 0x1d4   :  { %v725_v31 = vmul.f32 0.01, %v724_v14 }
 0x1d6   :  { %v726_v15 = vmax.f32 %v724_v14, %v725_v31  ;;  %v7641_v14 = vpack.c.bf16 %v1478_v42, %v1475_v43  ;;  %v1440_v31 = vld [vmem:[#allocation2 + $0x160] sm:$0xff] }
 0x1d8   :  { %v7483_v48 = vand.u32 4294901760, %v726_v15 }
 0x1da   :  { %v826_v22 = vsub.f32 %v726_v15, %v7483_v48  ;;  %v1441_v15 = vld [vmem:[#allocation2 + $0x168] sm:$0xff] }
 0x1dc   :  { %v827_v13 = vand.u32 4294901760, %v826_v22 }
 0x1de   :  { %v828_v18 = vsub.f32 %v826_v22, %v827_v13 }
 0x1e0   :  { %v829_v60 = vand.u32 4294901760, %v828_v18 }
 0x1e2   :  { %5065 = vmatmul.mubr.f32.vlgmr.msra.gmra.mrb[0].mxu1 %v829_v60 }
 0x1e3   :  { %6252 = vmatpush3.bf16.msra.mxu1 %v7393_v44  ;;  %5099 = vmatprep.mubr.msk.f32.mxu1 %vm7051_vm0, %v7052_v1  ;;  %v8917_v44 = vand.u32 4294901760, %v7337_v10  ;;  %v8921_v10 = vand.u32 4294901760, %v7345_v41  ;;  %v8927_v41 = vand.u32 4294901760, %v7357_v53  ;;  %v1431_v53 = vld [vmem:[#allocation2 + $0x118] sm:$0xff] }
 0x1e4   :  { %6253 = vmatprep.subr.bf16.mxu1 %v7050_v0 }
 0x1e7   :  { %6255 = vmatpush3.bf16.msra.mxu1 %v7397_v54  ;;  %v8918_v54 = vand.u32 4294901760, %v7339_v11  ;;  %v8922_v11 = vand.u32 4294901760, %v7347_v16  ;;  %v8928_v16 = vand.u32 4294901760, %v7359_v56 }
 0x1e8   :  { %6256 = vmatprep.subr.bf16.mxu1 %v7050_v0 }
 0x1e9   :  { %v6323_v62 = vpack.c.bf16 %v8918_v54, %v8917_v44 }
 0x1eb   :  { %6258 = vmatpush3.bf16.msra.mxu1 %v7407_v3  ;;  %v8919_v3 = vand.u32 4294901760, %v7341_v30  ;;  %v8924_v30 = vand.u32 4294901760, %v7351_v47  ;;  %v8930_v47 = vand.u32 4294901760, %v7365_v21  ;;  %v1432_v21 = vld [vmem:[#allocation2 + $0x120] sm:$0xff] }
 0x1ec   :  { %6259 = vmatprep.subr.bf16.mxu1 %v7050_v0 }
 0x1ef   :  { %6261 = vmatpush3.bf16.msra.mxu1 %v7417_v37  ;;  %v8920_v37 = vand.u32 4294901760, %v7343_v40 }
 0x1f0   :  { %6262 = vmatprep.subr.bf16.mxu1 %v7050_v0 }
 0x1f3   :  { %6264 = vmatpush3.bf16.msra.mxu1 %v7427_v57  ;;  %v6326_v57 = vpack.c.bf16 %v8920_v37, %v8919_v3  ;;  %v1442_v37 = vld [vmem:[#allocation2 + $0x170] sm:$0xff] }
 0x1f4   :  { %6265 = vmatprep.subr.bf16.mxu1 %v7050_v0 }
 0x1f7   :  { %6267 = vmatpush3.bf16.msra.mxu1 %v7437_v26  ;;  %v6329_v26 = vpack.c.bf16 %v8922_v11, %v8921_v10 }
 0x1f8   :  { %6268 = vmatprep.subr.bf16.mxu1 %v7050_v0 }
 0x1fb   :  { %6270 = vmatpush3.bf16.msra.mxu1 %v7447_v4  ;;  %v8923_v4 = vand.u32 4294901760, %v7349_v46  ;;  %v8929_v46 = vand.u32 4294901760, %v7363_v20 }
 0x1fc   :  { %6271 = vmatprep.subr.bf16.mxu1 %v7050_v0 }
 0x1fd   :  { %v6332_v40 = vpack.c.bf16 %v8924_v30, %v8923_v4  ;;  %v7666_v4 = vsub.f32 %v1437_v61, %v1472_v35  ;;  %v7669_v30 = vsub.f32 %v1438_v63, %v1475_v43 }
 0x1ff   :  { %6273 = vmatpush3.bf16.msra.mxu1 %v7455_v7  ;;  %v8925_v7 = vand.u32 4294901760, %v7353_v17  ;;  %v8931_v17 = vand.u32 4294901760, %v7370_v23  ;;  %v1433_v23 = vld [vmem:[#allocation2 + $0x128] sm:$0xff] }
 0x200   :  { %6274 = vmatprep.subr.bf16.mxu1 %v7050_v0 }
 0x202   :  { %5100 = vmatmul.mubr.f32.vlgmr.msra.gmra.mrb[0].mxu1 %v7483_v48 }
 0x203   :  { %6276 = vmatpush3.bf16.msra.mxu1 %v6275_v8  ;;  %5134 = vmatprep.mubr.msk.f32.mxu1 %vm7051_vm0, %v7052_v1  ;;  %v8926_v8 = vand.u32 4294901760, %v7355_v49  ;;  %v8932_v49 = vand.u32 4294901760, %v7375_v24  ;;  %v1460_v24 = vand.u32 4294901760, %v1433_v23 }
 0x204   :  { %6277 = vmatprep.subr.bf16.mxu1 %v7050_v0 }
 0x205   :  { %v7657_v3 = vsub.f32 %v1433_v23, %v1460_v24 }
 0x207   :  { %6279 = vmatpush3.bf16.msra.mxu1 %v6278_v9  ;;  %v6335_v9 = vpack.c.bf16 %v8926_v8, %v8925_v7 }
 0x208   :  { %6280 = vmatprep.subr.bf16.mxu1 %v7050_v0 }
 0x20b   :  { %6282 = vmatpush3.bf16.msra.mxu1 %v6281_v6  ;;  %v6338_v6 = vpack.c.bf16 %v8928_v16, %v8927_v41 }
 0x20c   :  { %6283 = vmatprep.subr.bf16.mxu1 %v7050_v0 }
 0x20f   :  { %6285 = vmatpush3.bf16.msra.mxu1 %v6284_v25  ;;  %v6341_v25 = vpack.c.bf16 %v8930_v47, %v8929_v46 }
 0x210   :  { %6286 = vmatprep.subr.bf16.mxu1 %v7050_v0 }
 0x213   :  { %6288 = vmatpush3.bf16.msra.mxu1 %v6287_v33  ;;  %v6344_v33 = vpack.c.bf16 %v8932_v49, %v8931_v17 }
 0x214   :  { %6289 = vmatprep.subr.bf16.mxu1 %v7050_v0 }
 0x217   :  { %6291 = vmatpush3.bf16.msra.mxu1 %v6290_v12 }
 0x218   :  { %6292 = vmatprep.subr.bf16.mxu1 %v7050_v0 }
 0x21b   :  { %6294 = vmatpush3.bf16.msra.mxu1 %v6293_v45  ;;  %v1434_v45 = vld [vmem:[#allocation2 + $0x130] sm:$0xff] }
 0x21c   :  { %6295 = vmatprep.subr.bf16.mxu1 %v7050_v0  ;;  %v1463_v55 = vand.u32 4294901760, %v1434_v45 }
 0x21e   :  { %v7660_v10 = vsub.f32 %v1434_v45, %v1463_v55 }
 0x21f   :  { %6297 = vmatpush3.bf16.msra.mxu1 %v6296_v50  ;;  %v1435_v50 = vld [vmem:[#allocation2 + $0x138] sm:$0xff] }
 0x220   :  { %6298 = vmatprep.subr.bf16.mxu1 %v7050_v0  ;;  %v1466_v34 = vand.u32 4294901760, %v1435_v50 }
 0x222   :  { %5135 = vmatmul.mubr.f32.vlgmr.msra.gmra.mrb[0].mxu1 %v826_v22  ;;  %v7633_v5 = vpack.c.bf16 %v1466_v34, %v1463_v55  ;;  %v1484_v22 = vand.u32 4294901760, %v1441_v15  ;;  %v7662_v11 = vsub.f32 %v1435_v50, %v1466_v34  ;;  %v8862_v34 = vand.u32 4294901760, %v7660_v10 }
 0x223   :  { %6300 = vmatpush3.bf16.msra.mxu1 %v7313_v38  ;;  %5169 = vmatprep.mubr.msk.f32.mxu1 %vm7051_vm0, %v7052_v1 }
 0x224   :  { %6301 = vmatprep.subr.bf16.mxu1 %v7050_v0  ;;  %v7675_v8 = vsub.f32 %v1441_v15, %v1484_v22 }
 0x227   :  { %6303 = vmatpush3.bf16.msra.mxu1 %v7317_v52 }
 0x228   :  { %6304 = vmatprep.subr.bf16.mxu1 %v7050_v0 }
 0x22b   :  { %6306 = vmatpush3.bf16.msra.mxu1 %v7321_v59 }
 0x22c   :  { %6307 = vmatprep.subr.bf16.mxu1 %v7050_v0 }
 0x22f   :  { %6309 = vmatpush3.bf16.msra.mxu1 %v7325_v2 }
 0x230   :  { %6310 = vmatprep.subr.bf16.mxu1 %v7050_v0 }
 0x233   :  { %6312 = vmatpush3.bf16.msra.mxu1 %v7329_v32 }
 0x234   :  { %6313 = vmatprep.subr.bf16.mxu1 %v7050_v0 }
 0x237   :  { %6315 = vmatpush3.bf16.msra.mxu1 %v7333_v39 }
 0x238   :  { %6316 = vmatprep.subr.bf16.mxu1 %v7050_v0 }
 0x23b   :  { %6318 = vmatpush3.bf16.msra.mxu1 %v7361_v19 }
 0x23c   :  { %6319 = vmatprep.subr.bf16.mxu1 %v7050_v0 }
 0x23f   :  { %6321 = vmatpush3.bf16.msra.mxu1 %v7373_v27 }
 0x240   :  { %6322 = vmatprep.subr.bf16.mxu1 %v7050_v0 }
 0x242   :  { %5170 = vmatmul.mubr.f32.vlgmr.msra.gmra.mrb[0].mxu1 %v827_v13 }
 0x243   :  { %6324 = vmatpush3.bf16.msra.mxu1 %v6323_v62  ;;  %5204 = vmatprep.mubr.msk.f32.mxu1 %vm7051_vm0, %v7052_v1 }
 0x244   :  { %6325 = vmatprep.subr.bf16.mxu1 %v7050_v0 }
 0x247   :  { %6327 = vmatpush3.bf16.msra.mxu1 %v6326_v57  ;;  %v1443_v57 = vld [vmem:[#allocation2 + $0x178] sm:$0xff] }
 0x248   :  { %6328 = vmatprep.subr.bf16.mxu1 %v7050_v0  ;;  %v1490_v41 = vand.u32 4294901760, %v1443_v57 }
 0x24b   :  { %6330 = vmatpush3.bf16.msra.mxu1 %v6329_v26  ;;  %v7664_v26 = vsub.f32 %v1436_v58, %v1469_v29  ;;  %v8861_v58 = vand.u32 4294901760, %v7662_v11  ;;  %v1581_v29 = vsub.f32 %v7660_v10, %v8862_v34 }
 0x24c   :  { %6331 = vmatprep.subr.bf16.mxu1 %v7050_v0 }
 0x24d   :  { %v1588_v35 = vsub.f32 %v7662_v11, %v8861_v58  ;;  %v1582_v63 = vand.u32 4294901760, %v1581_v29  ;;  %v8860_v43 = vand.u32 4294901760, %v7664_v26 }
 0x24f   :  { %6333 = vmatpush3.bf16.msra.mxu1 %v6332_v40  ;;  %v7671_v40 = vsub.f32 %v1439_v51, %v1478_v42  ;;  %v1589_v51 = vand.u32 4294901760, %v1588_v35  ;;  %v8859_v42 = vand.u32 4294901760, %v7666_v4  ;;  %v1595_v15 = vsub.f32 %v7664_v26, %v8860_v43 }
 0x250   :  { %6334 = vmatprep.subr.bf16.mxu1 %v7050_v0 }
 0x253   :  { %6336 = vmatpush3.bf16.msra.mxu1 %v6335_v9  ;;  %v1487_v9 = vand.u32 4294901760, %v1442_v37 }
 0x254   :  { %6337 = vmatprep.subr.bf16.mxu1 %v7050_v0 }
 0x255   :  { %v7679_v46 = vpack.c.bf16 %v1490_v41, %v1487_v9  ;;  %v7681_v47 = vsub.f32 %v1442_v37, %v1487_v9  ;;  %v8857_v9 = vand.u32 4294901760, %v7671_v40 }
 0x257   :  { %6339 = vmatpush3.bf16.msra.mxu1 %v6338_v6 }
 0x258   :  { %6340 = vmatprep.subr.bf16.mxu1 %v7050_v0 }
 0x25b   :  { %6342 = vmatpush3.bf16.msra.mxu1 %v6341_v25  ;;  %v7683_v25 = vsub.f32 %v1443_v57, %v1490_v41  ;;  %v8858_v57 = vand.u32 4294901760, %v7669_v30 }
 0x25c   :  { %6343 = vmatprep.subr.bf16.mxu1 %v7050_v0 }
 0x25d   :  { %v8853_v29 = vand.u32 4294901760, %v7683_v25 }
 0x25f   :  { %6345 = vmatpush3.bf16.msra.mxu1 %v6344_v33 }
 0x260   :  { %6346 = vmatprep.subr.bf16.mxu1 %v7050_v0 }
 0x262   :  { %5205 = vmatmul.mubr.f32.vlgmr.msra.gmra.mrb[0].mxu1 %v7483_v48 }
 0x263   :  { %6348 = vmatpush3.bf16.msra.mxu1 %v7313_v38  ;;  %5239 = vmatprep.mubr.msk.f32.mxu1 %vm7051_vm0, %v7052_v1  ;;  %v1428_v38 = vld [vmem:[#allocation2 + $0x100] sm:$0xff] }
 0x264   :  { %6349 = vmatprep.subr.bf16.mxu1 %v7050_v0 }
 0x267   :  { %6351 = vmatpush3.bf16.msra.mxu1 %v7317_v52  ;;  %v1429_v52 = vld [vmem:[#allocation2 + $0x108] sm:$0xff] }
 0x268   :  { %6352 = vmatprep.subr.bf16.mxu1 %v7050_v0 }
 0x26b   :  { %6354 = vmatpush3.bf16.msra.mxu1 %v7321_v59  ;;  %v1445_v59 = vand.u32 4294901760, %v1428_v38 }
 0x26c   :  { %6355 = vmatprep.subr.bf16.mxu1 %v7050_v0 }
 0x26d   :  { %v7645_v13 = vsub.f32 %v1428_v38, %v1445_v59 }
 0x26f   :  { %6357 = vmatpush3.bf16.msra.mxu1 %v7325_v2  ;;  %v1448_v2 = vand.u32 4294901760, %v1429_v52  ;;  %v8868_v16 = vand.u32 4294901760, %v7645_v13 }
 0x270   :  { %6358 = vmatprep.subr.bf16.mxu1 %v7050_v0 }
 0x271   :  { %v7647_v18 = vsub.f32 %v1429_v52, %v1448_v2  ;;  %v1539_v17 = vsub.f32 %v7645_v13, %v8868_v16 }
 0x273   :  { %6360 = vmatpush3.bf16.msra.mxu1 %v7329_v32  ;;  %v7621_v32 = vpack.c.bf16 %v1448_v2, %v1445_v59  ;;  %v8867_v6 = vand.u32 4294901760, %v7647_v18  ;;  %v1540_v52 = vand.u32 4294901760, %v1539_v17  ;;  %v1609_v17 = vsub.f32 %v7669_v30, %v8858_v57 }
 0x274   :  { %6361 = vmatprep.subr.bf16.mxu1 %v7050_v0 }
 0x275   :  { %6372 = vmatpush3.bf16.msra.mxu0 %v7621_v32  ;;  %v1546_v49 = vsub.f32 %v7647_v18, %v8867_v6 }
 0x276   :  { %6373 = vmatprep.subr.bf16.mxu0 %v7050_v0 }
 0x277   :  { %6363 = vmatpush3.bf16.msra.mxu1 %v7333_v39  ;;  %v1430_v39 = vld [vmem:[#allocation2 + $0x110] sm:$0xff]  ;;  %v1547_v59 = vand.u32 4294901760, %v1546_v49  ;;  %v1616_v49 = vsub.f32 %v7671_v40, %v8857_v9 }
 0x278   :  { %6364 = vmatprep.subr.bf16.mxu1 %v7050_v0  ;;  %v1451_v56 = vand.u32 4294901760, %v1430_v39 }
 0x27a   :  { %v7651_v44 = vsub.f32 %v1430_v39, %v1451_v56 }
 0x27b   :  { %6366 = vmatpush3.bf16.msra.mxu1 %v7361_v19  ;;  %v1454_v19 = vand.u32 4294901760, %v1431_v53 }
 0x27c   :  { %6367 = vmatprep.subr.bf16.mxu1 %v7050_v0  ;;  %v8866_v33 = vand.u32 4294901760, %v7651_v44 }
 0x27d   :  { %v7625_v20 = vpack.c.bf16 %v1454_v19, %v1451_v56  ;;  %v7653_v54 = vsub.f32 %v1431_v53, %v1454_v19  ;;  %v8863_v56 = vand.u32 4294901760, %v7657_v3  ;;  %v7703_v19 = vpack.c.bf16 %v1547_v59, %v1540_v52 }
 0x27e   :  { %v1553_v2 = vsub.f32 %v7651_v44, %v8866_v33  ;;  %v1610_v52 = vand.u32 4294901760, %v1609_v17  ;;  %v1617_v59 = vand.u32 4294901760, %v1616_v49 }
 0x27f   :  { %6369 = vmatpush3.bf16.msra.mxu1 %v7373_v27  ;;  %6375 = vmatpush3.bf16.msra.mxu0 %v7625_v20  ;;  %v1457_v27 = vand.u32 4294901760, %v1432_v21  ;;  %v8865_v38 = vand.u32 4294901760, %v7653_v54  ;;  %v6422_v17 = vpack.c.bf16 %v7653_v54, %v7651_v44 }
 0x280   :  { %6514 = vmatprep.subr.bf16.mxu1 %v7050_v0  ;;  %6376 = vmatprep.subr.bf16.mxu0 %v7050_v0 }
 0x281   :  { %v7629_v12 = vpack.c.bf16 %v1460_v24, %v1457_v27  ;;  %v7655_v62 = vsub.f32 %v1432_v21, %v1457_v27  ;;  %v1560_v39 = vsub.f32 %v7653_v54, %v8865_v38  ;;  %v1554_v21 = vand.u32 4294901760, %v1553_v2 }
 0x282   :  { %5240 = vmatmul.mubr.f32.vlgmr.msra.gmra.mrb[0].mxu1 %v7483_v48  ;;  %v1481_v48 = vand.u32 4294901760, %v1440_v31  ;;  %v1574_v24 = vsub.f32 %v7657_v3, %v8863_v56 }
 0x283   :  { %5484 = vmatprep.mubr.msk.f32.mxu1 %vm7051_vm0, %v7052_v1  ;;  %6378 = vmatpush3.bf16.msra.mxu0 %v7629_v12  ;;  %v8864_v53 = vand.u32 4294901760, %v7655_v62  ;;  %v1561_v23 = vand.u32 4294901760, %v1560_v39  ;;  %v8855_v39 = vand.u32 4294901760, %v7675_v8  ;;  %v6425_v49 = vpack.c.bf16 %v7657_v3, %v7655_v62 }
 0x284   :  { %6379 = vmatprep.subr.bf16.mxu0 %v7050_v0  ;;  %v7649_v60 = vpack.c.bf16 %v1484_v22, %v1481_v48  ;;  %v7673_v7 = vsub.f32 %v1440_v31, %v1481_v48  ;;  %v1575_v55 = vand.u32 4294901760, %v1574_v24  ;;  %v7725_v31 = vpack.c.bf16 %v1589_v51, %v1582_v63 }
 0x285   :  { %v1567_v27 = vsub.f32 %v7655_v62, %v8864_v53  ;;  %v7711_v45 = vpack.c.bf16 %v1561_v23, %v1554_v21  ;;  %v1602_v48 = vsub.f32 %v7666_v4, %v8859_v42  ;;  %v1596_v22 = vand.u32 4294901760, %v1595_v15 }
 0x286   :  { %v8856_v2 = vand.u32 4294901760, %v7673_v7  ;;  %v7745_v21 = vpack.c.bf16 %v1617_v59, %v1610_v52  ;;  %v1644_v51 = vsub.f32 %v7683_v25, %v8853_v29  ;;  %v6428_v52 = vpack.c.bf16 %v7662_v11, %v7660_v10 }
 0x287   :  { %6381 = vmatpush3.bf16.msra.mxu0 %v7633_v5  ;;  %v1568_v50 = vand.u32 4294901760, %v1567_v27  ;;  %v1603_v37 = vand.u32 4294901760, %v1602_v48  ;;  %v1630_v27 = vsub.f32 %v7675_v8, %v8855_v39  ;;  %v6431_v59 = vpack.c.bf16 %v7666_v4, %v7664_v26 }
 0x288   :  { %6382 = vmatprep.subr.bf16.mxu0 %v7050_v0  ;;  %v1623_v23 = vsub.f32 %v7673_v7, %v8856_v2  ;;  %v1645_v48 = vand.u32 4294901760, %v1644_v51 }
 0x289   :  { %v7715_v61 = vpack.c.bf16 %v1575_v55, %v1568_v50  ;;  %v7735_v41 = vpack.c.bf16 %v1603_v37, %v1596_v22  ;;  %v1631_v50 = vand.u32 4294901760, %v1630_v27  ;;  %v8854_v55 = vand.u32 4294901760, %v7681_v47 }
 0x28a   :  { %v1624_v24 = vand.u32 4294901760, %v1623_v23  ;;  %v6419_v37 = vpack.c.bf16 %v7647_v18, %v7645_v13  ;;  %v6434_v23 = vpack.c.bf16 %v7671_v40, %v7669_v30  ;;  %v6437_v27 = vpack.c.bf16 %v7675_v8, %v7673_v7 }
 0x28b   :  { %6384 = vmatpush3.bf16.msra.mxu0 %v7637_v36  ;;  %v1637_v63 = vsub.f32 %v7681_v47, %v8854_v55 }
 0x28c   :  { %6385 = vmatprep.subr.bf16.mxu0 %v7050_v0  ;;  %v7755_v35 = vpack.c.bf16 %v1631_v50, %v1624_v24  ;;  %v6440_v24 = vpack.c.bf16 %v7683_v25, %v7681_v47 }
 0x28d   :  { %v1638_v15 = vand.u32 4294901760, %v1637_v63 }
 0x28f   :  { %6387 = vmatpush3.bf16.msra.mxu0 %v7641_v14  ;;  %v6416_v22 = vpack.c.bf16 %v1645_v48, %v1638_v15 }
 0x290   :  { %6388 = vmatprep.subr.bf16.mxu0 %v7050_v0 }
 0x293   :  { %6390 = vmatpush3.bf16.msra.mxu0 %v7649_v60 }
 0x294   :  { %6391 = vmatprep.subr.bf16.mxu0 %v7050_v0 }
 0x297   :  { %6393 = vmatpush3.bf16.msra.mxu0 %v7679_v46 }
 0x298   :  { %6394 = vmatprep.subr.bf16.mxu0 %v7050_v0 }
 0x355   :  { %v1381_v50 = vpop.f32.mrb[0].mxu1 }
 0x356   :  { %v1385_v63 = vrot.slane %v1381_v50, 4  ;;  %v1391_v51 = vmul.f32 %v1381_v50, %v1381_v50  ;;  %v5241_v15 = vpop.f32.mrb[1].mxu1 }
 0x358   :  { %v1386_v48 = vadd.f32 %v1385_v63, %v1381_v50  ;;  %v1392_v29 = vrot.slane %v1391_v51, 4  ;;  %v4200_v63 = vld [vmem:[%s8835_s2 + $0x1] sm:$0x1] }
 0x35a   :  { %v1387_v55 = vrot.slane %v1386_v48, 2  ;;  %v1393_v39 = vadd.f32 %v1392_v29, %v1391_v51 }
 0x35c   :  { %v1388_v2 = vadd.f32 %v1387_v55, %v1386_v48  ;;  %v1394_v9 = vrot.slane %v1393_v39, 2  ;;  %v4201_v55 = vld [vmem:[%s8835_s2 + $0x6] sm:$0x1] }
 0x35d   :  { %v2136_v48 = vld [vmem:[#allocation2 + $0x1c0] sm:$0xff] }
 0x35e   :  { %v1389_v57 = vrot.slane %v1388_v2, 1  ;;  %v1395_v42 = vadd.f32 %v1394_v9, %v1393_v39 }
 0x360   :  { %v1390_v43 = vadd.f32 %v1389_v57, %v1388_v2  ;;  %v1396_v58 = vrot.slane %v1395_v42, 1 }
 0x362   :  { %v1397_v34 = vadd.f32 %v1396_v58, %v1395_v42  ;;  %v1398_v56 = vmul.f32 0.125, %v1390_v43 }
 0x364   :  { %v1399_v53 = vmul.f32 0.125, %v1397_v34  ;;  %v1400_v38 = vmul.f32 %v1398_v56, %v1398_v56 }
 0x366   :  { %v1401_v33 = vsub.f32 %v1399_v53, %v1400_v38 }
 0x368   :  { %v1404_v6 = vadd.f32 1e-05, %v1401_v33 }
 0x36a   :  { %7015 = vrsqrt.f32 %v1404_v6 }
 0x374   :  { %v7016_v15 = vpop.eup %7015 }
 0x375   :  { %v1406_v16 = vmul.f32 %v7016_v15, %v4200_v63  ;;  %v2137_v63 = vld [vmem:[#allocation2 + $0x1c8] sm:$0xff]  ;;  %v2169_v15 = vand.u32 4294901760, %v2136_v48 }
 0x377   :  { %v1409_v9 = vmul.f32 %v1406_v16, %v1398_v56  ;;  %v1415_v57 = vrot.slane %v1406_v16, %v7476_v28  ;;  %v8933_v16 = vand.u32 4294901760, %v7645_v13  ;;  %v8934_v56 = vand.u32 4294901760, %v7647_v18 }
 0x378   :  { %v8937_v13 = vand.u32 4294901760, %v7655_v62  ;;  %v8938_v18 = vand.u32 4294901760, %v7657_v3  ;;  %v8943_v62 = vand.u32 4294901760, %v7669_v30  ;;  %v8944_v3 = vand.u32 4294901760, %v7671_v40  ;;  %v2131_v30 = vld [vmem:[#allocation2 + $0x198] sm:$0xff] }
 0x379   :  { %v1410_v58 = vsub.f32 %v4201_v55, %v1409_v9  ;;  %v1417_v43 = vmul.f32 %v1415_v57, %v1381_v50  ;;  %v2154_v40 = vand.u32 4294901760, %v2131_v30  ;;  %v2172_v55 = vand.u32 4294901760, %v2137_v63  ;;  %v2138_v57 = vld [vmem:[#allocation2 + $0x1d0] sm:$0xff] }
 0x37b   :  { %v1422_v34 = vrot.slane %v1410_v58, %v7476_v28  ;;  %v7940_v9 = vpack.c.bf16 %v2172_v55, %v2169_v15  ;;  %v2139_v58 = vld [vmem:[#allocation2 + $0x1d8] sm:$0xff] }
 0x37d   :  { %v1424_v38 = vadd.f32 %v1422_v34, %v1417_v43  ;;  %v2175_v43 = vand.u32 4294901760, %v2138_v57  ;;  %v2178_v34 = vand.u32 4294901760, %v2139_v58 }
 0x37f   :  { %v1425_v33 = vmul.f32 0.01, %v1424_v38 }
 0x381   :  { %v1426_v6 = vmax.f32 %v1424_v38, %v1425_v33  ;;  %v7944_v38 = vpack.c.bf16 %v2178_v34, %v2175_v43  ;;  %v2140_v33 = vld [vmem:[#allocation2 + $0x1e0] sm:$0xff] }
 0x383   :  { %v7787_v53 = vand.u32 4294901760, %v1426_v6 }
 0x385   :  { %v1526_v42 = vsub.f32 %v1426_v6, %v7787_v53  ;;  %v2141_v6 = vld [vmem:[#allocation2 + $0x1e8] sm:$0xff] }
 0x387   :  { %v1527_v2 = vand.u32 4294901760, %v1526_v42 }
 0x389   :  { %v1528_v39 = vsub.f32 %v1526_v42, %v1527_v2 }
 0x38b   :  { %v1529_v29 = vand.u32 4294901760, %v1528_v39 }
 0x38d   :  { %5275 = vmatmul.mubr.f32.vlgmr.msra.gmra.mrb[2].mxu0 %v1529_v29 }
 0x38e   :  { %6396 = vmatpush3.bf16.msra.mxu0 %v7703_v19  ;;  %5309 = vmatprep.mubr.msk.f32.mxu0 %vm7051_vm0, %v7052_v1  ;;  %v6467_v19 = vpack.c.bf16 %v8934_v56, %v8933_v16  ;;  %v7956_v56 = vsub.f32 %v2131_v30, %v2154_v40 }
 0x38f   :  { %6397 = vmatprep.subr.bf16.mxu0 %v7050_v0 }
 0x392   :  { %6399 = vmatpush3.bf16.msra.mxu0 %v7711_v45  ;;  %v8935_v45 = vand.u32 4294901760, %v7651_v44  ;;  %v8940_v44 = vand.u32 4294901760, %v7662_v11  ;;  %v8946_v11 = vand.u32 4294901760, %v7675_v8  ;;  %v2132_v8 = vld [vmem:[#allocation2 + $0x1a0] sm:$0xff] }
 0x393   :  { %6400 = vmatprep.subr.bf16.mxu0 %v7050_v0 }
 0x396   :  { %6402 = vmatpush3.bf16.msra.mxu0 %v7715_v61  ;;  %v8936_v61 = vand.u32 4294901760, %v7653_v54 }
 0x397   :  { %6403 = vmatprep.subr.bf16.mxu0 %v7050_v0 }
 0x39a   :  { %6405 = vmatpush3.bf16.msra.mxu0 %v7725_v31  ;;  %v6470_v31 = vpack.c.bf16 %v8936_v61, %v8935_v45  ;;  %v2142_v61 = vld [vmem:[#allocation2 + $0x1f0] sm:$0xff] }
 0x39b   :  { %6406 = vmatprep.subr.bf16.mxu0 %v7050_v0 }
 0x39e   :  { %6408 = vmatpush3.bf16.msra.mxu0 %v7735_v41  ;;  %v6473_v41 = vpack.c.bf16 %v8938_v18, %v8937_v13 }
 0x39f   :  { %6409 = vmatprep.subr.bf16.mxu0 %v7050_v0 }
 0x3a2   :  { %6411 = vmatpush3.bf16.msra.mxu0 %v7745_v21  ;;  %v8939_v21 = vand.u32 4294901760, %v7660_v10  ;;  %v8945_v10 = vand.u32 4294901760, %v7673_v7 }
 0x3a3   :  { %6412 = vmatprep.subr.bf16.mxu0 %v7050_v0 }
 0x3a4   :  { %v6476_v54 = vpack.c.bf16 %v8940_v44, %v8939_v21  ;;  %v7969_v21 = vsub.f32 %v2137_v63, %v2172_v55  ;;  %v7972_v44 = vsub.f32 %v2138_v57, %v2175_v43 }
 0x3a6   :  { %6414 = vmatpush3.bf16.msra.mxu0 %v7755_v35  ;;  %v8941_v35 = vand.u32 4294901760, %v7664_v26  ;;  %v8947_v26 = vand.u32 4294901760, %v7681_v47  ;;  %v2157_v47 = vand.u32 4294901760, %v2132_v8 }
 0x3a7   :  { %6415 = vmatprep.subr.bf16.mxu0 %v7050_v0 }
 0x3aa   :  { %6417 = vmatpush3.bf16.msra.mxu0 %v6416_v22  ;;  %v8942_v22 = vand.u32 4294901760, %v7666_v4  ;;  %v8948_v4 = vand.u32 4294901760, %v7683_v25 }
 0x3ab   :  { %6418 = vmatprep.subr.bf16.mxu0 %v7050_v0 }
 0x3ad   :  { %5310 = vmatmul.mubr.f32.vlgmr.msra.gmra.mrb[2].mxu0 %v7787_v53 }
 0x3ae   :  { %6420 = vmatpush3.bf16.msra.mxu0 %v6419_v37  ;;  %5344 = vmatprep.mubr.msk.f32.mxu0 %vm7051_vm0, %v7052_v1  ;;  %v6479_v37 = vpack.c.bf16 %v8942_v22, %v8941_v35 }
 0x3af   :  { %6421 = vmatprep.subr.bf16.mxu0 %v7050_v0 }
 0x3b2   :  { %6423 = vmatpush3.bf16.msra.mxu0 %v6422_v17  ;;  %v6482_v17 = vpack.c.bf16 %v8944_v3, %v8943_v62 }
 0x3b3   :  { %6424 = vmatprep.subr.bf16.mxu0 %v7050_v0 }
 0x3b6   :  { %6426 = vmatpush3.bf16.msra.mxu0 %v6425_v49  ;;  %v6485_v49 = vpack.c.bf16 %v8946_v11, %v8945_v10 }
 0x3b7   :  { %6427 = vmatprep.subr.bf16.mxu0 %v7050_v0 }
 0x3ba   :  { %6429 = vmatpush3.bf16.msra.mxu0 %v6428_v52  ;;  %v6488_v52 = vpack.c.bf16 %v8948_v4, %v8947_v26 }
 0x3bb   :  { %6430 = vmatprep.subr.bf16.mxu0 %v7050_v0 }
 0x3be   :  { %6432 = vmatpush3.bf16.msra.mxu0 %v6431_v59 }
 0x3bf   :  { %6433 = vmatprep.subr.bf16.mxu0 %v7050_v0 }
 0x3c2   :  { %6435 = vmatpush3.bf16.msra.mxu0 %v6434_v23  ;;  %v2134_v23 = vld [vmem:[#allocation2 + $0x1b0] sm:$0xff] }
 0x3c3   :  { %6436 = vmatprep.subr.bf16.mxu0 %v7050_v0 }
 0x3c6   :  { %6438 = vmatpush3.bf16.msra.mxu0 %v6437_v27  ;;  %v2135_v27 = vld [vmem:[#allocation2 + $0x1b8] sm:$0xff] }
 0x3c7   :  { %6439 = vmatprep.subr.bf16.mxu0 %v7050_v0  ;;  %v2166_v50 = vand.u32 4294901760, %v2135_v27 }
 0x3c9   :  { %v7965_v18 = vsub.f32 %v2135_v27, %v2166_v50 }
 0x3ca   :  { %6441 = vmatpush3.bf16.msra.mxu0 %v6440_v24  ;;  %v2163_v24 = vand.u32 4294901760, %v2134_v23 }
 0x3cb   :  { %6442 = vmatprep.subr.bf16.mxu0 %v7050_v0 }
 0x3cc   :  { %v7936_v51 = vpack.c.bf16 %v2166_v50, %v2163_v24  ;;  %v7963_v13 = vsub.f32 %v2134_v23, %v2163_v24 }
 0x3cd   :  { %5345 = vmatmul.mubr.f32.vlgmr.msra.gmra.mrb[2].mxu0 %v1526_v42  ;;  %v2184_v42 = vand.u32 4294901760, %v2141_v6 }
 0x3ce   :  { %6444 = vmatpush3.bf16.msra.mxu0 %v7621_v32  ;;  %5379 = vmatprep.mubr.msk.f32.mxu0 %vm7051_vm0, %v7052_v1  ;;  %v8878_v50 = vand.u32 4294901760, %v7963_v13 }
 0x3cf   :  { %6445 = vmatprep.subr.bf16.mxu0 %v7050_v0  ;;  %v7978_v22 = vsub.f32 %v2141_v6, %v2184_v42 }
 0x3d2   :  { %6447 = vmatpush3.bf16.msra.mxu0 %v7625_v20 }
 0x3d3   :  { %6448 = vmatprep.subr.bf16.mxu0 %v7050_v0 }
 0x3d6   :  { %6450 = vmatpush3.bf16.msra.mxu0 %v7629_v12 }
 0x3d7   :  { %6451 = vmatprep.subr.bf16.mxu0 %v7050_v0 }
 0x3da   :  { %6453 = vmatpush3.bf16.msra.mxu0 %v7633_v5 }
 0x3db   :  { %6454 = vmatprep.subr.bf16.mxu0 %v7050_v0 }
 0x3de   :  { %6456 = vmatpush3.bf16.msra.mxu0 %v7637_v36 }
 0x3df   :  { %6457 = vmatprep.subr.bf16.mxu0 %v7050_v0 }
 0x3e2   :  { %6459 = vmatpush3.bf16.msra.mxu0 %v7641_v14 }
 0x3e3   :  { %6460 = vmatprep.subr.bf16.mxu0 %v7050_v0 }
 0x3e6   :  { %6462 = vmatpush3.bf16.msra.mxu0 %v7649_v60 }
 0x3e7   :  { %6463 = vmatprep.subr.bf16.mxu0 %v7050_v0 }
 0x3ea   :  { %6465 = vmatpush3.bf16.msra.mxu0 %v7679_v46 }
 0x3eb   :  { %6466 = vmatprep.subr.bf16.mxu0 %v7050_v0 }
 0x3ed   :  { %5380 = vmatmul.mubr.f32.vlgmr.msra.gmra.mrb[2].mxu0 %v1527_v2 }
 0x3ee   :  { %6468 = vmatpush3.bf16.msra.mxu0 %v6467_v19  ;;  %5414 = vmatprep.mubr.msk.f32.mxu0 %vm7051_vm0, %v7052_v1  ;;  %v7958_v19 = vsub.f32 %v2132_v8, %v2157_v47 }
 0x3ef   :  { %6469 = vmatprep.subr.bf16.mxu0 %v7050_v0 }
 0x3f0   :  { %v8880_v30 = vand.u32 4294901760, %v7958_v19 }
 0x3f2   :  { %6471 = vmatpush3.bf16.msra.mxu0 %v6470_v31  ;;  %v2143_v31 = vld [vmem:[#allocation2 + $0x1f8] sm:$0xff] }
 0x3f3   :  { %6472 = vmatprep.subr.bf16.mxu0 %v7050_v0  ;;  %v2190_v62 = vand.u32 4294901760, %v2143_v31 }
 0x3f6   :  { %6474 = vmatpush3.bf16.msra.mxu0 %v6473_v41  ;;  %v7967_v41 = vsub.f32 %v2136_v48, %v2169_v15  ;;  %v8877_v48 = vand.u32 4294901760, %v7965_v18  ;;  %v2281_v15 = vsub.f32 %v7963_v13, %v8878_v50 }
 0x3f7   :  { %6475 = vmatprep.subr.bf16.mxu0 %v7050_v0 }
 0x3f8   :  { %v2288_v55 = vsub.f32 %v7965_v18, %v8877_v48  ;;  %v2282_v57 = vand.u32 4294901760, %v2281_v15  ;;  %v8876_v43 = vand.u32 4294901760, %v7967_v41 }
 0x3fa   :  { %6477 = vmatpush3.bf16.msra.mxu0 %v6476_v54  ;;  %v7974_v54 = vsub.f32 %v2139_v58, %v2178_v34  ;;  %v2289_v58 = vand.u32 4294901760, %v2288_v55  ;;  %v8875_v34 = vand.u32 4294901760, %v7969_v21  ;;  %v2295_v6 = vsub.f32 %v7967_v41, %v8876_v43 }
 0x3fb   :  { %6478 = vmatprep.subr.bf16.mxu0 %v7050_v0 }
 0x3fe   :  { %6480 = vmatpush3.bf16.msra.mxu0 %v6479_v37  ;;  %v2187_v37 = vand.u32 4294901760, %v2142_v61 }
 0x3ff   :  { %6481 = vmatprep.subr.bf16.mxu0 %v7050_v0 }
 0x400   :  { %v7982_v10 = vpack.c.bf16 %v2190_v62, %v2187_v37  ;;  %v7984_v11 = vsub.f32 %v2142_v61, %v2187_v37  ;;  %v8873_v37 = vand.u32 4294901760, %v7974_v54 }
 0x402   :  { %6483 = vmatpush3.bf16.msra.mxu0 %v6482_v17 }
 0x403   :  { %6484 = vmatprep.subr.bf16.mxu0 %v7050_v0 }
 0x406   :  { %6486 = vmatpush3.bf16.msra.mxu0 %v6485_v49  ;;  %v7986_v49 = vsub.f32 %v2143_v31, %v2190_v62  ;;  %v8874_v31 = vand.u32 4294901760, %v7972_v44 }
 0x407   :  { %6487 = vmatprep.subr.bf16.mxu0 %v7050_v0 }
 0x408   :  { %v8869_v15 = vand.u32 4294901760, %v7986_v49 }
 0x40a   :  { %6489 = vmatpush3.bf16.msra.mxu0 %v6488_v52 }
 0x40b   :  { %6490 = vmatprep.subr.bf16.mxu0 %v7050_v0 }
 0x40d   :  { %5415 = vmatmul.mubr.f32.vlgmr.msra.gmra.mrb[2].mxu0 %v7787_v53 }
 0x40e   :  { %6492 = vmatpush3.bf16.msra.mxu0 %v7621_v32  ;;  %5449 = vmatprep.mubr.msk.f32.mxu0 %vm7051_vm0, %v7052_v1  ;;  %v2128_v32 = vld [vmem:[#allocation2 + $0x180] sm:$0xff] }
 0x40f   :  { %6493 = vmatprep.subr.bf16.mxu0 %v7050_v0 }
 0x412   :  { %6495 = vmatpush3.bf16.msra.mxu0 %v7625_v20  ;;  %v2129_v20 = vld [vmem:[#allocation2 + $0x188] sm:$0xff] }
 0x413   :  { %6496 = vmatprep.subr.bf16.mxu0 %v7050_v0 }
 0x416   :  { %6498 = vmatpush3.bf16.msra.mxu0 %v7629_v12  ;;  %v2145_v12 = vand.u32 4294901760, %v2128_v32 }
 0x417   :  { %6499 = vmatprep.subr.bf16.mxu0 %v7050_v0 }
 0x418   :  { %v7948_v2 = vsub.f32 %v2128_v32, %v2145_v12  ;;  %v8881_v32 = vand.u32 4294901760, %v7956_v56 }
 0x41a   :  { %6501 = vmatpush3.bf16.msra.mxu0 %v7633_v5  ;;  %v2148_v5 = vand.u32 4294901760, %v2129_v20  ;;  %v8884_v3 = vand.u32 4294901760, %v7948_v2 }
 0x41b   :  { %6502 = vmatprep.subr.bf16.mxu0 %v7050_v0 }
 0x41c   :  { %v7950_v39 = vsub.f32 %v2129_v20, %v2148_v5  ;;  %v2239_v26 = vsub.f32 %v7948_v2, %v8884_v3 }
 0x41e   :  { %6504 = vmatpush3.bf16.msra.mxu0 %v7637_v36  ;;  %v7924_v36 = vpack.c.bf16 %v2148_v5, %v2145_v12  ;;  %v8883_v17 = vand.u32 4294901760, %v7950_v39  ;;  %v2240_v20 = vand.u32 4294901760, %v2239_v26  ;;  %v2309_v26 = vsub.f32 %v7972_v44, %v8874_v31 }
 0x41f   :  { %6505 = vmatprep.subr.bf16.mxu0 %v7050_v0 }
 0x420   :  { %6516 = vmatpush3.bf16.msra.mxu1 %v7924_v36  ;;  %v2246_v4 = vsub.f32 %v7950_v39, %v8883_v17 }
 0x421   :  { %6517 = vmatprep.subr.bf16.mxu1 %v7050_v0 }
 0x422   :  { %6507 = vmatpush3.bf16.msra.mxu0 %v7641_v14  ;;  %v2130_v14 = vld [vmem:[#allocation2 + $0x190] sm:$0xff]  ;;  %v2247_v12 = vand.u32 4294901760, %v2246_v4  ;;  %v2316_v4 = vsub.f32 %v7974_v54, %v8873_v37 }
 0x423   :  { %6508 = vmatprep.subr.bf16.mxu0 %v7050_v0 }
 0x426   :  { %6510 = vmatpush3.bf16.msra.mxu0 %v7649_v60  ;;  %v2151_v60 = vand.u32 4294901760, %v2130_v14 }
 0x427   :  { %6511 = vmatprep.subr.bf16.mxu0 %v7050_v0 }
 0x428   :  { %v7928_v7 = vpack.c.bf16 %v2154_v40, %v2151_v60  ;;  %v7954_v16 = vsub.f32 %v2130_v14, %v2151_v60  ;;  %v2260_v14 = vsub.f32 %v7956_v56, %v8881_v32  ;;  %v8006_v40 = vpack.c.bf16 %v2247_v12, %v2240_v20 }
 0x429   :  { %v2310_v20 = vand.u32 4294901760, %v2309_v26  ;;  %v2317_v12 = vand.u32 4294901760, %v2316_v4 }
 0x42a   :  { %6513 = vmatpush3.bf16.msra.mxu0 %v7679_v46  ;;  %v2133_v46 = vld [vmem:[#allocation2 + $0x1a8] sm:$0xff]  ;;  %6519 = vmatpush3.bf16.msra.mxu1 %v7928_v7  ;;  %v8882_v52 = vand.u32 4294901760, %v7954_v16  ;;  %v6566_v26 = vpack.c.bf16 %v7956_v56, %v7954_v16 }
 0x42b   :  { %6658 = vmatprep.subr.bf16.mxu0 %v7050_v0  ;;  %v2160_v25 = vand.u32 4294901760, %v2133_v46  ;;  %6520 = vmatprep.subr.bf16.mxu1 %v7050_v0 }
 0x42c   :  { %v2253_v5 = vsub.f32 %v7954_v16, %v8882_v52 }
 0x42d   :  { %5450 = vmatmul.mubr.f32.vlgmr.msra.gmra.mrb[2].mxu0 %v7787_v53  ;;  %v7932_v59 = vpack.c.bf16 %v2160_v25, %v2157_v47  ;;  %v2181_v53 = vand.u32 4294901760, %v2140_v33  ;;  %v7960_v45 = vsub.f32 %v2133_v46, %v2160_v25  ;;  %v2261_v46 = vand.u32 4294901760, %v2260_v14 }
 0x42e   :  { %5694 = vmatprep.mubr.msk.f32.mxu0 %vm7051_vm0, %v7052_v1  ;;  %v2254_v8 = vand.u32 4294901760, %v2253_v5  ;;  %v2267_v47 = vsub.f32 %v7958_v19, %v8880_v30  ;;  %v8871_v14 = vand.u32 4294901760, %v7978_v22 }
 0x42f   :  { %6522 = vmatpush3.bf16.msra.mxu1 %v7932_v59  ;;  %v7952_v29 = vpack.c.bf16 %v2184_v42, %v2181_v53  ;;  %v7976_v35 = vsub.f32 %v2140_v33, %v2181_v53  ;;  %v8879_v60 = vand.u32 4294901760, %v7960_v45  ;;  %v8028_v33 = vpack.c.bf16 %v2289_v58, %v2282_v57 }
 0x430   :  { %6523 = vmatprep.subr.bf16.mxu1 %v7050_v0  ;;  %v8014_v23 = vpack.c.bf16 %v2261_v46, %v2254_v8  ;;  %v2268_v27 = vand.u32 4294901760, %v2267_v47  ;;  %v2302_v53 = vsub.f32 %v7969_v21, %v8875_v34  ;;  %v2296_v42 = vand.u32 4294901760, %v2295_v6 }
 0x431   :  { %v2274_v25 = vsub.f32 %v7960_v45, %v8879_v60  ;;  %v8872_v5 = vand.u32 4294901760, %v7976_v35  ;;  %v8048_v8 = vpack.c.bf16 %v2317_v12, %v2310_v20  ;;  %v2330_v47 = vsub.f32 %v7978_v22, %v8871_v14 }
 0x432   :  { %v2303_v61 = vand.u32 4294901760, %v2302_v53  ;;  %v2344_v58 = vsub.f32 %v7986_v49, %v8869_v15  ;;  %v6569_v4 = vpack.c.bf16 %v7960_v45, %v7958_v19  ;;  %v6572_v20 = vpack.c.bf16 %v7965_v18, %v7963_v13 }
 0x433   :  { %6525 = vmatpush3.bf16.msra.mxu1 %v7936_v51  ;;  %v2275_v24 = vand.u32 4294901760, %v2274_v25  ;;  %v2323_v46 = vsub.f32 %v7976_v35, %v8872_v5  ;;  %v6575_v12 = vpack.c.bf16 %v7969_v21, %v7967_v41 }
 0x434   :  { %6526 = vmatprep.subr.bf16.mxu1 %v7050_v0  ;;  %v8038_v62 = vpack.c.bf16 %v2303_v61, %v2296_v42  ;;  %v2345_v53 = vand.u32 4294901760, %v2344_v58  ;;  %v6563_v61 = vpack.c.bf16 %v7950_v39, %v7948_v2 }
 0x435   :  { %v8018_v63 = vpack.c.bf16 %v2275_v24, %v2268_v27  ;;  %v2324_v25 = vand.u32 4294901760, %v2323_v46  ;;  %v2331_v27 = vand.u32 4294901760, %v2330_v47  ;;  %v8870_v24 = vand.u32 4294901760, %v7984_v11 }
 0x436   :  { %v6578_v46 = vpack.c.bf16 %v7974_v54, %v7972_v44  ;;  %v6581_v47 = vpack.c.bf16 %v7978_v22, %v7976_v35 }
 0x437   :  { %6528 = vmatpush3.bf16.msra.mxu1 %v7940_v9  ;;  %v8058_v55 = vpack.c.bf16 %v2331_v27, %v2324_v25  ;;  %v2337_v57 = vsub.f32 %v7984_v11, %v8870_v24  ;;  %v6584_v25 = vpack.c.bf16 %v7986_v49, %v7984_v11 }
 0x438   :  { %6529 = vmatprep.subr.bf16.mxu1 %v7050_v0 }
 0x439   :  { %v2338_v6 = vand.u32 4294901760, %v2337_v57 }
 0x43b   :  { %6531 = vmatpush3.bf16.msra.mxu1 %v7944_v38  ;;  %v6560_v42 = vpack.c.bf16 %v2345_v53, %v2338_v6 }
 0x43c   :  { %6532 = vmatprep.subr.bf16.mxu1 %v7050_v0 }
 0x43f   :  { %6534 = vmatpush3.bf16.msra.mxu1 %v7952_v29 }
 0x440   :  { %6535 = vmatprep.subr.bf16.mxu1 %v7050_v0 }
 0x443   :  { %6537 = vmatpush3.bf16.msra.mxu1 %v7982_v10 }
 0x444   :  { %6538 = vmatprep.subr.bf16.mxu1 %v7050_v0 }
 0x500   :  { %v2081_v27 = vpop.f32.mrb[2].mxu0 }
 0x501   :  { %v2085_v57 = vrot.slane %v2081_v27, 4  ;;  %v2091_v58 = vmul.f32 %v2081_v27, %v2081_v27  ;;  %v5451_v6 = vpop.f32.mrb[3].mxu0 }
 0x503   :  { %v2086_v53 = vadd.f32 %v2085_v57, %v2081_v27  ;;  %v2092_v15 = vrot.slane %v2091_v58, 4  ;;  %v4202_v57 = vld [vmem:[%s8835_s2 + $0x2] sm:$0x1] }
 0x505   :  { %v2087_v24 = vrot.slane %v2086_v53, 2  ;;  %v2093_v14 = vadd.f32 %v2092_v15, %v2091_v58 }
 0x507   :  { %v2088_v5 = vadd.f32 %v2087_v24, %v2086_v53  ;;  %v2094_v37 = vrot.slane %v2093_v14, 2  ;;  %v4203_v24 = vld [vmem:[%s8835_s2 + $0x7] sm:$0x1] }
 0x508   :  { %v2836_v53 = vld [vmem:[#allocation2 + $0x240] sm:$0xff] }
 0x509   :  { %v2089_v31 = vrot.slane %v2088_v5, 1  ;;  %v2095_v34 = vadd.f32 %v2094_v37, %v2093_v14 }
 0x50b   :  { %v2090_v43 = vadd.f32 %v2089_v31, %v2088_v5  ;;  %v2096_v48 = vrot.slane %v2095_v34, 1 }
 0x50d   :  { %v2097_v50 = vadd.f32 %v2096_v48, %v2095_v34  ;;  %v2098_v60 = vmul.f32 0.125, %v2090_v43 }
 0x50f   :  { %v2099_v30 = vmul.f32 0.125, %v2097_v50  ;;  %v2100_v32 = vmul.f32 %v2098_v60, %v2098_v60 }
 0x511   :  { %v2101_v52 = vsub.f32 %v2099_v30, %v2100_v32 }
 0x513   :  { %v2104_v17 = vadd.f32 1e-05, %v2101_v52 }
 0x515   :  { %7017 = vrsqrt.f32 %v2104_v17 }
 0x51f   :  { %v7018_v6 = vpop.eup %7017 }
 0x520   :  { %v2106_v3 = vmul.f32 %v7018_v6, %v4202_v57  ;;  %v2837_v57 = vld [vmem:[#allocation2 + $0x248] sm:$0xff]  ;;  %v2869_v6 = vand.u32 4294901760, %v2836_v53 }
 0x522   :  { %v2109_v37 = vmul.f32 %v2106_v3, %v2098_v60  ;;  %v2115_v31 = vrot.slane %v2106_v3, %v7476_v28  ;;  %v8949_v3 = vand.u32 4294901760, %v7948_v2  ;;  %v8950_v60 = vand.u32 4294901760, %v7950_v39 }
 0x523   :  { %v8953_v2 = vand.u32 4294901760, %v7958_v19  ;;  %v8954_v39 = vand.u32 4294901760, %v7960_v45  ;;  %v8959_v19 = vand.u32 4294901760, %v7972_v44  ;;  %v8960_v45 = vand.u32 4294901760, %v7974_v54  ;;  %v2831_v44 = vld [vmem:[#allocation2 + $0x218] sm:$0xff] }
 0x524   :  { %v2110_v48 = vsub.f32 %v4203_v24, %v2109_v37  ;;  %v2117_v43 = vmul.f32 %v2115_v31, %v2081_v27  ;;  %v2854_v54 = vand.u32 4294901760, %v2831_v44  ;;  %v2872_v24 = vand.u32 4294901760, %v2837_v57  ;;  %v2838_v31 = vld [vmem:[#allocation2 + $0x250] sm:$0xff] }
 0x526   :  { %v2122_v50 = vrot.slane %v2110_v48, %v7476_v28  ;;  %v8243_v37 = vpack.c.bf16 %v2872_v24, %v2869_v6  ;;  %v2839_v48 = vld [vmem:[#allocation2 + $0x258] sm:$0xff] }
 0x528   :  { %v2124_v32 = vadd.f32 %v2122_v50, %v2117_v43  ;;  %v2875_v43 = vand.u32 4294901760, %v2838_v31  ;;  %v2878_v50 = vand.u32 4294901760, %v2839_v48 }
 0x52a   :  { %v2125_v52 = vmul.f32 0.01, %v2124_v32 }
 0x52c   :  { %v2126_v17 = vmax.f32 %v2124_v32, %v2125_v52  ;;  %v8247_v32 = vpack.c.bf16 %v2878_v50, %v2875_v43  ;;  %v2840_v52 = vld [vmem:[#allocation2 + $0x260] sm:$0xff] }
 0x52e   :  { %v8090_v30 = vand.u32 4294901760, %v2126_v17 }
 0x530   :  { %v2226_v34 = vsub.f32 %v2126_v17, %v8090_v30  ;;  %v2841_v17 = vld [vmem:[#allocation2 + $0x268] sm:$0xff] }
 0x532   :  { %v2227_v5 = vand.u32 4294901760, %v2226_v34 }
 0x534   :  { %v2228_v14 = vsub.f32 %v2226_v34, %v2227_v5 }
 0x536   :  { %v2229_v15 = vand.u32 4294901760, %v2228_v14 }
 0x538   :  { %5485 = vmatmul.mubr.f32.vlgmr.msra.gmra.mrb[2].mxu1 %v2229_v15 }
 0x539   :  { %6540 = vmatpush3.bf16.msra.mxu1 %v8006_v40  ;;  %5519 = vmatprep.mubr.msk.f32.mxu1 %vm7051_vm0, %v7052_v1  ;;  %v6611_v40 = vpack.c.bf16 %v8950_v60, %v8949_v3  ;;  %v8259_v60 = vsub.f32 %v2831_v44, %v2854_v54 }
 0x53a   :  { %6541 = vmatprep.subr.bf16.mxu1 %v7050_v0 }
 0x53d   :  { %6543 = vmatpush3.bf16.msra.mxu1 %v8014_v23  ;;  %v8951_v23 = vand.u32 4294901760, %v7954_v16  ;;  %v8956_v16 = vand.u32 4294901760, %v7965_v18  ;;  %v8962_v18 = vand.u32 4294901760, %v7978_v22  ;;  %v2832_v22 = vld [vmem:[#allocation2 + $0x220] sm:$0xff] }
 0x53e   :  { %6544 = vmatprep.subr.bf16.mxu1 %v7050_v0 }
 0x541   :  { %6546 = vmatpush3.bf16.msra.mxu1 %v8018_v63  ;;  %v8952_v63 = vand.u32 4294901760, %v7956_v56 }
 0x542   :  { %6547 = vmatprep.subr.bf16.mxu1 %v7050_v0 }
 0x545   :  { %6549 = vmatpush3.bf16.msra.mxu1 %v8028_v33  ;;  %v6614_v33 = vpack.c.bf16 %v8952_v63, %v8951_v23  ;;  %v2842_v63 = vld [vmem:[#allocation2 + $0x270] sm:$0xff] }
 0x546   :  { %6550 = vmatprep.subr.bf16.mxu1 %v7050_v0 }
 0x549   :  { %6552 = vmatpush3.bf16.msra.mxu1 %v8038_v62  ;;  %v6617_v62 = vpack.c.bf16 %v8954_v39, %v8953_v2 }
 0x54a   :  { %6553 = vmatprep.subr.bf16.mxu1 %v7050_v0 }
 0x54d   :  { %6555 = vmatpush3.bf16.msra.mxu1 %v8048_v8  ;;  %v8955_v8 = vand.u32 4294901760, %v7963_v13  ;;  %v8961_v13 = vand.u32 4294901760, %v7976_v35 }
 0x54e   :  { %6556 = vmatprep.subr.bf16.mxu1 %v7050_v0 }
 0x54f   :  { %v6620_v56 = vpack.c.bf16 %v8956_v16, %v8955_v8  ;;  %v8272_v8 = vsub.f32 %v2837_v57, %v2872_v24  ;;  %v8275_v16 = vsub.f32 %v2838_v31, %v2875_v43 }
 0x551   :  { %6558 = vmatpush3.bf16.msra.mxu1 %v8058_v55  ;;  %v8957_v55 = vand.u32 4294901760, %v7967_v41  ;;  %v8963_v41 = vand.u32 4294901760, %v7984_v11  ;;  %v2857_v11 = vand.u32 4294901760, %v2832_v22 }
 0x552   :  { %6559 = vmatprep.subr.bf16.mxu1 %v7050_v0 }
 0x555   :  { %6561 = vmatpush3.bf16.msra.mxu1 %v6560_v42  ;;  %v8958_v42 = vand.u32 4294901760, %v7969_v21  ;;  %v8964_v21 = vand.u32 4294901760, %v7986_v49 }
 0x556   :  { %6562 = vmatprep.subr.bf16.mxu1 %v7050_v0 }
 0x558   :  { %5520 = vmatmul.mubr.f32.vlgmr.msra.gmra.mrb[2].mxu1 %v8090_v30 }
 0x559   :  { %6564 = vmatpush3.bf16.msra.mxu1 %v6563_v61  ;;  %5554 = vmatprep.mubr.msk.f32.mxu1 %vm7051_vm0, %v7052_v1  ;;  %v6623_v61 = vpack.c.bf16 %v8958_v42, %v8957_v55 }
 0x55a   :  { %6565 = vmatprep.subr.bf16.mxu1 %v7050_v0 }
 0x55d   :  { %6567 = vmatpush3.bf16.msra.mxu1 %v6566_v26  ;;  %v6626_v26 = vpack.c.bf16 %v8960_v45, %v8959_v19 }
 0x55e   :  { %6568 = vmatprep.subr.bf16.mxu1 %v7050_v0 }
 0x561   :  { %6570 = vmatpush3.bf16.msra.mxu1 %v6569_v4  ;;  %v6629_v4 = vpack.c.bf16 %v8962_v18, %v8961_v13 }
 0x562   :  { %6571 = vmatprep.subr.bf16.mxu1 %v7050_v0 }
 0x565   :  { %6573 = vmatpush3.bf16.msra.mxu1 %v6572_v20  ;;  %v6632_v20 = vpack.c.bf16 %v8964_v21, %v8963_v41 }
 0x566   :  { %6574 = vmatprep.subr.bf16.mxu1 %v7050_v0 }
 0x569   :  { %6576 = vmatpush3.bf16.msra.mxu1 %v6575_v12 }
 0x56a   :  { %6577 = vmatprep.subr.bf16.mxu1 %v7050_v0 }
 0x56d   :  { %6579 = vmatpush3.bf16.msra.mxu1 %v6578_v46  ;;  %v2834_v46 = vld [vmem:[#allocation2 + $0x230] sm:$0xff] }
 0x56e   :  { %6580 = vmatprep.subr.bf16.mxu1 %v7050_v0 }
 0x571   :  { %6582 = vmatpush3.bf16.msra.mxu1 %v6581_v47  ;;  %v2835_v47 = vld [vmem:[#allocation2 + $0x238] sm:$0xff] }
 0x572   :  { %6583 = vmatprep.subr.bf16.mxu1 %v7050_v0  ;;  %v2866_v27 = vand.u32 4294901760, %v2835_v47 }
 0x574   :  { %v8268_v39 = vsub.f32 %v2835_v47, %v2866_v27 }
 0x575   :  { %6585 = vmatpush3.bf16.msra.mxu1 %v6584_v25  ;;  %v2863_v25 = vand.u32 4294901760, %v2834_v46 }
 0x576   :  { %6586 = vmatprep.subr.bf16.mxu1 %v7050_v0 }
 0x577   :  { %v8239_v58 = vpack.c.bf16 %v2866_v27, %v2863_v25  ;;  %v8266_v2 = vsub.f32 %v2834_v46, %v2863_v25 }
 0x578   :  { %5555 = vmatmul.mubr.f32.vlgmr.msra.gmra.mrb[2].mxu1 %v2226_v34  ;;  %v2884_v34 = vand.u32 4294901760, %v2841_v17 }
 0x579   :  { %6588 = vmatpush3.bf16.msra.mxu1 %v7924_v36  ;;  %5589 = vmatprep.mubr.msk.f32.mxu1 %vm7051_vm0, %v7052_v1  ;;  %v8894_v27 = vand.u32 4294901760, %v8266_v2 }
 0x57a   :  { %6589 = vmatprep.subr.bf16.mxu1 %v7050_v0  ;;  %v8281_v42 = vsub.f32 %v2841_v17, %v2884_v34 }
 0x57d   :  { %6591 = vmatpush3.bf16.msra.mxu1 %v7928_v7 }
 0x57e   :  { %6592 = vmatprep.subr.bf16.mxu1 %v7050_v0 }
 0x581   :  { %6594 = vmatpush3.bf16.msra.mxu1 %v7932_v59 }
 0x582   :  { %6595 = vmatprep.subr.bf16.mxu1 %v7050_v0 }
 0x585   :  { %6597 = vmatpush3.bf16.msra.mxu1 %v7936_v51 }
 0x586   :  { %6598 = vmatprep.subr.bf16.mxu1 %v7050_v0 }
 0x589   :  { %6600 = vmatpush3.bf16.msra.mxu1 %v7940_v9 }
 0x58a   :  { %6601 = vmatprep.subr.bf16.mxu1 %v7050_v0 }
 0x58d   :  { %6603 = vmatpush3.bf16.msra.mxu1 %v7944_v38 }
 0x58e   :  { %6604 = vmatprep.subr.bf16.mxu1 %v7050_v0 }
 0x591   :  { %6606 = vmatpush3.bf16.msra.mxu1 %v7952_v29 }
 0x592   :  { %6607 = vmatprep.subr.bf16.mxu1 %v7050_v0 }
 0x595   :  { %6609 = vmatpush3.bf16.msra.mxu1 %v7982_v10 }
 0x596   :  { %6610 = vmatprep.subr.bf16.mxu1 %v7050_v0 }
 0x598   :  { %5590 = vmatmul.mubr.f32.vlgmr.msra.gmra.mrb[2].mxu1 %v2227_v5 }
 0x599   :  { %6612 = vmatpush3.bf16.msra.mxu1 %v6611_v40  ;;  %5624 = vmatprep.mubr.msk.f32.mxu1 %vm7051_vm0, %v7052_v1  ;;  %v8261_v40 = vsub.f32 %v2832_v22, %v2857_v11 }
 0x59a   :  { %6613 = vmatprep.subr.bf16.mxu1 %v7050_v0 }
 0x59b   :  { %v8896_v44 = vand.u32 4294901760, %v8261_v40 }
 0x59d   :  { %6615 = vmatpush3.bf16.msra.mxu1 %v6614_v33  ;;  %v2843_v33 = vld [vmem:[#allocation2 + $0x278] sm:$0xff] }
 0x59e   :  { %6616 = vmatprep.subr.bf16.mxu1 %v7050_v0  ;;  %v2890_v19 = vand.u32 4294901760, %v2843_v33 }
 0x5a1   :  { %6618 = vmatpush3.bf16.msra.mxu1 %v6617_v62  ;;  %v8270_v62 = vsub.f32 %v2836_v53, %v2869_v6  ;;  %v8893_v53 = vand.u32 4294901760, %v8268_v39  ;;  %v2981_v6 = vsub.f32 %v8266_v2, %v8894_v27 }
 0x5a2   :  { %6619 = vmatprep.subr.bf16.mxu1 %v7050_v0 }
 0x5a3   :  { %v2988_v24 = vsub.f32 %v8268_v39, %v8893_v53  ;;  %v2982_v31 = vand.u32 4294901760, %v2981_v6  ;;  %v8892_v43 = vand.u32 4294901760, %v8270_v62 }
 0x5a5   :  { %6621 = vmatpush3.bf16.msra.mxu1 %v6620_v56  ;;  %v8277_v56 = vsub.f32 %v2839_v48, %v2878_v50  ;;  %v2989_v48 = vand.u32 4294901760, %v2988_v24  ;;  %v8891_v50 = vand.u32 4294901760, %v8272_v8  ;;  %v2995_v17 = vsub.f32 %v8270_v62, %v8892_v43 }
 0x5a6   :  { %6622 = vmatprep.subr.bf16.mxu1 %v7050_v0 }
 0x5a9   :  { %6624 = vmatpush3.bf16.msra.mxu1 %v6623_v61  ;;  %v2887_v61 = vand.u32 4294901760, %v2842_v63 }
 0x5aa   :  { %6625 = vmatprep.subr.bf16.mxu1 %v7050_v0 }
 0x5ab   :  { %v8285_v13 = vpack.c.bf16 %v2890_v19, %v2887_v61  ;;  %v8287_v18 = vsub.f32 %v2842_v63, %v2887_v61  ;;  %v8889_v61 = vand.u32 4294901760, %v8277_v56 }
 0x5ad   :  { %6627 = vmatpush3.bf16.msra.mxu1 %v6626_v26 }
 0x5ae   :  { %6628 = vmatprep.subr.bf16.mxu1 %v7050_v0 }
 0x5b1   :  { %6630 = vmatpush3.bf16.msra.mxu1 %v6629_v4  ;;  %v8289_v4 = vsub.f32 %v2843_v33, %v2890_v19  ;;  %v8890_v33 = vand.u32 4294901760, %v8275_v16 }
 0x5b2   :  { %6631 = vmatprep.subr.bf16.mxu1 %v7050_v0 }
 0x5b3   :  { %v8885_v6 = vand.u32 4294901760, %v8289_v4 }
 0x5b5   :  { %6633 = vmatpush3.bf16.msra.mxu1 %v6632_v20 }
 0x5b6   :  { %6634 = vmatprep.subr.bf16.mxu1 %v7050_v0 }
 0x5b8   :  { %5625 = vmatmul.mubr.f32.vlgmr.msra.gmra.mrb[2].mxu1 %v8090_v30 }
 0x5b9   :  { %6636 = vmatpush3.bf16.msra.mxu1 %v7924_v36  ;;  %5659 = vmatprep.mubr.msk.f32.mxu1 %vm7051_vm0, %v7052_v1  ;;  %v2828_v36 = vld [vmem:[#allocation2 + $0x200] sm:$0xff] }
 0x5ba   :  { %6637 = vmatprep.subr.bf16.mxu1 %v7050_v0 }
 0x5bd   :  { %6639 = vmatpush3.bf16.msra.mxu1 %v7928_v7  ;;  %v2829_v7 = vld [vmem:[#allocation2 + $0x208] sm:$0xff] }
 0x5be   :  { %6640 = vmatprep.subr.bf16.mxu1 %v7050_v0 }
 0x5c1   :  { %6642 = vmatpush3.bf16.msra.mxu1 %v7932_v59  ;;  %v2845_v59 = vand.u32 4294901760, %v2828_v36 }
 0x5c2   :  { %6643 = vmatprep.subr.bf16.mxu1 %v7050_v0 }
 0x5c3   :  { %v8251_v5 = vsub.f32 %v2828_v36, %v2845_v59  ;;  %v8897_v36 = vand.u32 4294901760, %v8259_v60 }
 0x5c5   :  { %6645 = vmatpush3.bf16.msra.mxu1 %v7936_v51  ;;  %v2848_v51 = vand.u32 4294901760, %v2829_v7  ;;  %v8900_v45 = vand.u32 4294901760, %v8251_v5 }
 0x5c6   :  { %6646 = vmatprep.subr.bf16.mxu1 %v7050_v0 }
 0x5c7   :  { %v8253_v14 = vsub.f32 %v2829_v7, %v2848_v51  ;;  %v2939_v41 = vsub.f32 %v8251_v5, %v8900_v45 }
 0x5c9   :  { %6648 = vmatpush3.bf16.msra.mxu1 %v7940_v9  ;;  %v8227_v9 = vpack.c.bf16 %v2848_v51, %v2845_v59  ;;  %v8899_v26 = vand.u32 4294901760, %v8253_v14  ;;  %v2940_v7 = vand.u32 4294901760, %v2939_v41  ;;  %v3009_v41 = vsub.f32 %v8275_v16, %v8890_v33 }
 0x5ca   :  { %6649 = vmatprep.subr.bf16.mxu1 %v7050_v0 }
 0x5cb   :  { %6660 = vmatpush3.bf16.msra.mxu0 %v8227_v9  ;;  %v2946_v21 = vsub.f32 %v8253_v14, %v8899_v26 }
 0x5cc   :  { %6661 = vmatprep.subr.bf16.mxu0 %v7050_v0 }
 0x5cd   :  { %6651 = vmatpush3.bf16.msra.mxu1 %v7944_v38  ;;  %v2830_v38 = vld [vmem:[#allocation2 + $0x210] sm:$0xff]  ;;  %v2947_v59 = vand.u32 4294901760, %v2946_v21  ;;  %v3016_v21 = vsub.f32 %v8277_v56, %v8889_v61 }
 0x5ce   :  { %6652 = vmatprep.subr.bf16.mxu1 %v7050_v0 }
 0x5d1   :  { %6654 = vmatpush3.bf16.msra.mxu1 %v7952_v29  ;;  %v2851_v29 = vand.u32 4294901760, %v2830_v38 }
 0x5d2   :  { %6655 = vmatprep.subr.bf16.mxu1 %v7050_v0 }
 0x5d3   :  { %v8231_v35 = vpack.c.bf16 %v2854_v54, %v2851_v29  ;;  %v8257_v3 = vsub.f32 %v2830_v38, %v2851_v29  ;;  %v2960_v38 = vsub.f32 %v8259_v60, %v8897_v36  ;;  %v8309_v54 = vpack.c.bf16 %v2947_v59, %v2940_v7 }
 0x5d4   :  { %v3010_v7 = vand.u32 4294901760, %v3009_v41  ;;  %v3017_v59 = vand.u32 4294901760, %v3016_v21 }
 0x5d5   :  { %6657 = vmatpush3.bf16.msra.mxu1 %v7982_v10  ;;  %v2833_v10 = vld [vmem:[#allocation2 + $0x228] sm:$0xff]  ;;  %6663 = vmatpush3.bf16.msra.mxu0 %v8231_v35  ;;  %v8898_v20 = vand.u32 4294901760, %v8257_v3  ;;  %v6710_v41 = vpack.c.bf16 %v8259_v60, %v8257_v3 }
 0x5d6   :  { %6802 = vmatprep.subr.bf16.mxu1 %v7050_v0  ;;  %v2860_v49 = vand.u32 4294901760, %v2833_v10  ;;  %6664 = vmatprep.subr.bf16.mxu0 %v7050_v0 }
 0x5d7   :  { %v2953_v51 = vsub.f32 %v8257_v3, %v8898_v20 }
 0x5d8   :  { %5660 = vmatmul.mubr.f32.vlgmr.msra.gmra.mrb[2].mxu1 %v8090_v30  ;;  %v8235_v12 = vpack.c.bf16 %v2860_v49, %v2857_v11  ;;  %v2881_v30 = vand.u32 4294901760, %v2840_v52  ;;  %v8263_v23 = vsub.f32 %v2833_v10, %v2860_v49  ;;  %v2961_v10 = vand.u32 4294901760, %v2960_v38 }
 0x5d9   :  { %5904 = vmatprep.mubr.msk.f32.mxu1 %vm7051_vm0, %v7052_v1  ;;  %v2954_v22 = vand.u32 4294901760, %v2953_v51  ;;  %v2967_v11 = vsub.f32 %v8261_v40, %v8896_v44  ;;  %v8887_v38 = vand.u32 4294901760, %v8281_v42 }
 0x5da   :  { %6666 = vmatpush3.bf16.msra.mxu0 %v8235_v12  ;;  %v8255_v15 = vpack.c.bf16 %v2884_v34, %v2881_v30  ;;  %v8279_v55 = vsub.f32 %v2840_v52, %v2881_v30  ;;  %v8895_v29 = vand.u32 4294901760, %v8263_v23  ;;  %v8331_v52 = vpack.c.bf16 %v2989_v48, %v2982_v31 }
 0x5db   :  { %6667 = vmatprep.subr.bf16.mxu0 %v7050_v0  ;;  %v8317_v46 = vpack.c.bf16 %v2961_v10, %v2954_v22  ;;  %v2968_v47 = vand.u32 4294901760, %v2967_v11  ;;  %v3002_v30 = vsub.f32 %v8272_v8, %v8891_v50  ;;  %v2996_v34 = vand.u32 4294901760, %v2995_v17 }
 0x5dc   :  { %v2974_v49 = vsub.f32 %v8263_v23, %v8895_v29  ;;  %v8888_v51 = vand.u32 4294901760, %v8279_v55  ;;  %v8351_v22 = vpack.c.bf16 %v3017_v59, %v3010_v7  ;;  %v3030_v11 = vsub.f32 %v8281_v42, %v8887_v38 }
 0x5dd   :  { %v3003_v63 = vand.u32 4294901760, %v3002_v30  ;;  %v3044_v48 = vsub.f32 %v8289_v4, %v8885_v6  ;;  %v6713_v21 = vpack.c.bf16 %v8263_v23, %v8261_v40  ;;  %v6716_v7 = vpack.c.bf16 %v8268_v39, %v8266_v2 }
 0x5de   :  { %6669 = vmatpush3.bf16.msra.mxu0 %v8239_v58  ;;  %v2975_v25 = vand.u32 4294901760, %v2974_v49  ;;  %v3023_v10 = vsub.f32 %v8279_v55, %v8888_v51  ;;  %v6719_v59 = vpack.c.bf16 %v8272_v8, %v8270_v62 }
 0x5df   :  { %6670 = vmatprep.subr.bf16.mxu0 %v7050_v0  ;;  %v8341_v19 = vpack.c.bf16 %v3003_v63, %v2996_v34  ;;  %v3045_v30 = vand.u32 4294901760, %v3044_v48  ;;  %v6707_v63 = vpack.c.bf16 %v8253_v14, %v8251_v5 }
 0x5e0   :  { %v8321_v57 = vpack.c.bf16 %v2975_v25, %v2968_v47  ;;  %v3024_v49 = vand.u32 4294901760, %v3023_v10  ;;  %v3031_v47 = vand.u32 4294901760, %v3030_v11  ;;  %v8886_v25 = vand.u32 4294901760, %v8287_v18 }
 0x5e1   :  { %v6722_v10 = vpack.c.bf16 %v8277_v56, %v8275_v16  ;;  %v6725_v11 = vpack.c.bf16 %v8281_v42, %v8279_v55 }
 0x5e2   :  { %6672 = vmatpush3.bf16.msra.mxu0 %v8243_v37  ;;  %v8361_v24 = vpack.c.bf16 %v3031_v47, %v3024_v49  ;;  %v3037_v31 = vsub.f32 %v8287_v18, %v8886_v25  ;;  %v6728_v49 = vpack.c.bf16 %v8289_v4, %v8287_v18 }
 0x5e3   :  { %6673 = vmatprep.subr.bf16.mxu0 %v7050_v0 }
 0x5e4   :  { %v3038_v17 = vand.u32 4294901760, %v3037_v31 }
 0x5e6   :  { %6675 = vmatpush3.bf16.msra.mxu0 %v8247_v32  ;;  %v6704_v34 = vpack.c.bf16 %v3045_v30, %v3038_v17 }
 0x5e7   :  { %6676 = vmatprep.subr.bf16.mxu0 %v7050_v0 }
 0x5ea   :  { %6678 = vmatpush3.bf16.msra.mxu0 %v8255_v15 }
 0x5eb   :  { %6679 = vmatprep.subr.bf16.mxu0 %v7050_v0 }
 0x5ee   :  { %6681 = vmatpush3.bf16.msra.mxu0 %v8285_v13 }
 0x5ef   :  { %6682 = vmatprep.subr.bf16.mxu0 %v7050_v0 }
 0x6ab   :  { %v2781_v47 = vpop.f32.mrb[2].mxu1 }
 0x6ac   :  { %v2785_v31 = vrot.slane %v2781_v47, 4  ;;  %v2791_v48 = vmul.f32 %v2781_v47, %v2781_v47  ;;  %v5661_v17 = vpop.f32.mrb[3].mxu1 }
 0x6ae   :  { %v2786_v30 = vadd.f32 %v2785_v31, %v2781_v47  ;;  %v2792_v6 = vrot.slane %v2791_v48, 4  ;;  %v4204_v31 = vld [vmem:[%s8835_s2 + $0x3] sm:$0x1] }
 0x6b0   :  { %v2787_v25 = vrot.slane %v2786_v30, 2  ;;  %v2793_v38 = vadd.f32 %v2792_v6, %v2791_v48 }
 0x6b2   :  { %v2788_v51 = vadd.f32 %v2787_v25, %v2786_v30  ;;  %v2794_v61 = vrot.slane %v2793_v38, 2  ;;  %v4205_v25 = vld [vmem:[%s8835_s2 + $0x8] sm:$0x1]  ;;  %v3536_v30 = vld [vmem:[#allocation2 + $0x2c0] sm:$0xff] }
 0x6b4   :  { %v2789_v33 = vrot.slane %v2788_v51, 1  ;;  %v2795_v50 = vadd.f32 %v2794_v61, %v2793_v38 }
 0x6b6   :  { %v2790_v43 = vadd.f32 %v2789_v33, %v2788_v51  ;;  %v2796_v53 = vrot.slane %v2795_v50, 1 }
 0x6b8   :  { %v2797_v27 = vadd.f32 %v2796_v53, %v2795_v50  ;;  %v2798_v29 = vmul.f32 0.125, %v2790_v43 }
 0x6ba   :  { %v2799_v44 = vmul.f32 0.125, %v2797_v27  ;;  %v2800_v36 = vmul.f32 %v2798_v29, %v2798_v29 }
 0x6bc   :  { %v2801_v20 = vsub.f32 %v2799_v44, %v2800_v36 }
 0x6be   :  { %v2804_v26 = vadd.f32 1e-05, %v2801_v20 }
 0x6c0   :  { %7019 = vrsqrt.f32 %v2804_v26 }
 0x6ca   :  { %v7020_v17 = vpop.eup %7019 }
 0x6cb   :  { %v2806_v45 = vmul.f32 %v7020_v17, %v4204_v31  ;;  %v3537_v31 = vld [vmem:[#allocation2 + $0x2c8] sm:$0xff]  ;;  %v3577_v17 = vand.u32 4294901760, %v3536_v30 }
 0x6cd   :  { %v2809_v61 = vmul.f32 %v2806_v45, %v2798_v29  ;;  %v2815_v33 = vrot.slane %v2806_v45, %v7476_v28  ;;  %v8965_v45 = vand.u32 4294901760, %v8251_v5  ;;  %v8966_v29 = vand.u32 4294901760, %v8253_v14 }
 0x6ce   :  { %v8969_v5 = vand.u32 4294901760, %v8261_v40  ;;  %v8970_v14 = vand.u32 4294901760, %v8263_v23  ;;  %v8975_v40 = vand.u32 4294901760, %v8275_v16  ;;  %v8976_v23 = vand.u32 4294901760, %v8277_v56  ;;  %v3531_v56 = vld [vmem:[#allocation2 + $0x298] sm:$0xff] }
 0x6cf   :  { %v2810_v53 = vsub.f32 %v4205_v25, %v2809_v61  ;;  %v2817_v43 = vmul.f32 %v2815_v33, %v2781_v47  ;;  %v3580_v25 = vand.u32 4294901760, %v3537_v31  ;;  %v3538_v33 = vld [vmem:[#allocation2 + $0x2d0] sm:$0xff] }
 0x6d1   :  { %v2822_v27 = vrot.slane %v2810_v53, %v7476_v28  ;;  %v8543_v61 = vpack.c.bf16 %v3580_v25, %v3577_v17  ;;  %v3539_v53 = vld [vmem:[#allocation2 + $0x2d8] sm:$0xff] }
 0x6d3   :  { %v2824_v36 = vadd.f32 %v2822_v27, %v2817_v43  ;;  %v3583_v43 = vand.u32 4294901760, %v3538_v33  ;;  %v3586_v27 = vand.u32 4294901760, %v3539_v53 }
 0x6d5   :  { %v2825_v20 = vmul.f32 0.01, %v2824_v36 }
 0x6d7   :  { %v2826_v26 = vmax.f32 %v2824_v36, %v2825_v20  ;;  %v8547_v36 = vpack.c.bf16 %v3586_v27, %v3583_v43  ;;  %v3540_v20 = vld [vmem:[#allocation2 + $0x2e0] sm:$0xff] }
 0x6d9   :  { %v8393_v44 = vand.u32 4294901760, %v2826_v26 }
 0x6db   :  { %v2926_v50 = vsub.f32 %v2826_v26, %v8393_v44  ;;  %v3541_v26 = vld [vmem:[#allocation2 + $0x2e8] sm:$0xff] }
 0x6dd   :  { %v2927_v51 = vand.u32 4294901760, %v2926_v50 }
 0x6df   :  { %v2928_v38 = vsub.f32 %v2926_v50, %v2927_v51 }
 0x6e1   :  { %v2929_v6 = vand.u32 4294901760, %v2928_v38 }
 0x6e3   :  { %5695 = vmatmul.mubr.f32.vlgmr.msra.gmra.mrb[4].mxu0 %v2929_v6 }
 0x6e4   :  { %6684 = vmatpush3.bf16.msra.mxu0 %v8309_v54  ;;  %5729 = vmatprep.mubr.msk.f32.mxu0 %vm7051_vm0, %v7052_v1  ;;  %v6755_v54 = vpack.c.bf16 %v8966_v29, %v8965_v45 }
 0x6e5   :  { %6685 = vmatprep.subr.bf16.mxu0 %v7050_v0 }
 0x6e8   :  { %6687 = vmatpush3.bf16.msra.mxu0 %v8317_v46  ;;  %v8967_v46 = vand.u32 4294901760, %v8257_v3  ;;  %v8972_v3 = vand.u32 4294901760, %v8268_v39  ;;  %v8978_v39 = vand.u32 4294901760, %v8281_v42  ;;  %v3532_v42 = vld [vmem:[#allocation2 + $0x2a0] sm:$0xff] }
 0x6e9   :  { %6688 = vmatprep.subr.bf16.mxu0 %v7050_v0 }
 0x6ec   :  { %6690 = vmatpush3.bf16.msra.mxu0 %v8321_v57  ;;  %v8968_v57 = vand.u32 4294901760, %v8259_v60 }
 0x6ed   :  { %6691 = vmatprep.subr.bf16.mxu0 %v7050_v0 }
 0x6f0   :  { %6693 = vmatpush3.bf16.msra.mxu0 %v8331_v52  ;;  %v6758_v52 = vpack.c.bf16 %v8968_v57, %v8967_v46  ;;  %v3542_v57 = vld [vmem:[#allocation2 + $0x2f0] sm:$0xff] }
 0x6f1   :  { %6694 = vmatprep.subr.bf16.mxu0 %v7050_v0 }
 0x6f4   :  { %6696 = vmatpush3.bf16.msra.mxu0 %v8341_v19  ;;  %v6761_v19 = vpack.c.bf16 %v8970_v14, %v8969_v5 }
 0x6f5   :  { %6697 = vmatprep.subr.bf16.mxu0 %v7050_v0 }
 0x6f8   :  { %6699 = vmatpush3.bf16.msra.mxu0 %v8351_v22  ;;  %v8971_v22 = vand.u32 4294901760, %v8266_v2  ;;  %v8977_v2 = vand.u32 4294901760, %v8279_v55  ;;  %v3562_v55 = vand.u32 4294901760, %v3531_v56 }
 0x6f9   :  { %6700 = vmatprep.subr.bf16.mxu0 %v7050_v0 }
 0x6fa   :  { %v6764_v60 = vpack.c.bf16 %v8972_v3, %v8971_v22  ;;  %v8559_v29 = vsub.f32 %v3531_v56, %v3562_v55  ;;  %v8572_v22 = vsub.f32 %v3537_v31, %v3580_v25  ;;  %v8575_v3 = vsub.f32 %v3538_v33, %v3583_v43 }
 0x6fc   :  { %6702 = vmatpush3.bf16.msra.mxu0 %v8361_v24  ;;  %v8973_v24 = vand.u32 4294901760, %v8270_v62  ;;  %v8979_v62 = vand.u32 4294901760, %v8287_v18  ;;  %v3565_v18 = vand.u32 4294901760, %v3532_v42 }
 0x6fd   :  { %6703 = vmatprep.subr.bf16.mxu0 %v7050_v0 }
 0x700   :  { %6705 = vmatpush3.bf16.msra.mxu0 %v6704_v34  ;;  %v8974_v34 = vand.u32 4294901760, %v8272_v8  ;;  %v8980_v8 = vand.u32 4294901760, %v8289_v4 }
 0x701   :  { %6706 = vmatprep.subr.bf16.mxu0 %v7050_v0 }
 0x703   :  { %5730 = vmatmul.mubr.f32.vlgmr.msra.gmra.mrb[4].mxu0 %v8393_v44 }
 0x704   :  { %6708 = vmatpush3.bf16.msra.mxu0 %v6707_v63  ;;  %5764 = vmatprep.mubr.msk.f32.mxu0 %vm7051_vm0, %v7052_v1  ;;  %v6767_v63 = vpack.c.bf16 %v8974_v34, %v8973_v24 }
 0x705   :  { %6709 = vmatprep.subr.bf16.mxu0 %v7050_v0 }
 0x708   :  { %6711 = vmatpush3.bf16.msra.mxu0 %v6710_v41  ;;  %v6770_v41 = vpack.c.bf16 %v8976_v23, %v8975_v40 }
 0x709   :  { %6712 = vmatprep.subr.bf16.mxu0 %v7050_v0 }
 0x70c   :  { %6714 = vmatpush3.bf16.msra.mxu0 %v6713_v21  ;;  %v6773_v21 = vpack.c.bf16 %v8978_v39, %v8977_v2 }
 0x70d   :  { %6715 = vmatprep.subr.bf16.mxu0 %v7050_v0 }
 0x710   :  { %6717 = vmatpush3.bf16.msra.mxu0 %v6716_v7  ;;  %v6776_v7 = vpack.c.bf16 %v8980_v8, %v8979_v62 }
 0x711   :  { %6718 = vmatprep.subr.bf16.mxu0 %v7050_v0 }
 0x714   :  { %6720 = vmatpush3.bf16.msra.mxu0 %v6719_v59 }
 0x715   :  { %6721 = vmatprep.subr.bf16.mxu0 %v7050_v0 }
 0x718   :  { %6723 = vmatpush3.bf16.msra.mxu0 %v6722_v10  ;;  %v3534_v10 = vld [vmem:[#allocation2 + $0x2b0] sm:$0xff] }
 0x719   :  { %6724 = vmatprep.subr.bf16.mxu0 %v7050_v0 }
 0x71c   :  { %6726 = vmatpush3.bf16.msra.mxu0 %v6725_v11  ;;  %v3535_v11 = vld [vmem:[#allocation2 + $0x2b8] sm:$0xff] }
 0x71d   :  { %6727 = vmatprep.subr.bf16.mxu0 %v7050_v0  ;;  %v3574_v47 = vand.u32 4294901760, %v3535_v11 }
 0x71f   :  { %v8568_v14 = vsub.f32 %v3535_v11, %v3574_v47 }
 0x720   :  { %6729 = vmatpush3.bf16.msra.mxu0 %v6728_v49  ;;  %v3571_v49 = vand.u32 4294901760, %v3534_v10 }
 0x721   :  { %6730 = vmatprep.subr.bf16.mxu0 %v7050_v0 }
 0x722   :  { %v8539_v48 = vpack.c.bf16 %v3574_v47, %v3571_v49  ;;  %v8566_v5 = vsub.f32 %v3534_v10, %v3571_v49 }
 0x723   :  { %5765 = vmatmul.mubr.f32.vlgmr.msra.gmra.mrb[4].mxu0 %v2926_v50  ;;  %v3592_v50 = vand.u32 4294901760, %v3541_v26 }
 0x724   :  { %6732 = vmatpush3.bf16.msra.mxu0 %v8227_v9  ;;  %5799 = vmatprep.mubr.msk.f32.mxu0 %vm7051_vm0, %v7052_v1  ;;  %v8910_v47 = vand.u32 4294901760, %v8566_v5 }
 0x725   :  { %6733 = vmatprep.subr.bf16.mxu0 %v7050_v0  ;;  %v8581_v34 = vsub.f32 %v3541_v26, %v3592_v50 }
 0x728   :  { %6735 = vmatpush3.bf16.msra.mxu0 %v8231_v35 }
 0x729   :  { %6736 = vmatprep.subr.bf16.mxu0 %v7050_v0 }
 0x72c   :  { %6738 = vmatpush3.bf16.msra.mxu0 %v8235_v12 }
 0x72d   :  { %6739 = vmatprep.subr.bf16.mxu0 %v7050_v0 }
 0x730   :  { %6741 = vmatpush3.bf16.msra.mxu0 %v8239_v58 }
 0x731   :  { %6742 = vmatprep.subr.bf16.mxu0 %v7050_v0 }
 0x734   :  { %6744 = vmatpush3.bf16.msra.mxu0 %v8243_v37 }
 0x735   :  { %6745 = vmatprep.subr.bf16.mxu0 %v7050_v0 }
 0x738   :  { %6747 = vmatpush3.bf16.msra.mxu0 %v8247_v32 }
 0x739   :  { %6748 = vmatprep.subr.bf16.mxu0 %v7050_v0 }
 0x73c   :  { %6750 = vmatpush3.bf16.msra.mxu0 %v8255_v15 }
 0x73d   :  { %6751 = vmatprep.subr.bf16.mxu0 %v7050_v0 }
 0x740   :  { %6753 = vmatpush3.bf16.msra.mxu0 %v8285_v13 }
 0x741   :  { %6754 = vmatprep.subr.bf16.mxu0 %v7050_v0 }
 0x743   :  { %5800 = vmatmul.mubr.f32.vlgmr.msra.gmra.mrb[4].mxu0 %v2927_v51 }
 0x744   :  { %6756 = vmatpush3.bf16.msra.mxu0 %v6755_v54  ;;  %5834 = vmatprep.mubr.msk.f32.mxu0 %vm7051_vm0, %v7052_v1  ;;  %v8561_v54 = vsub.f32 %v3532_v42, %v3565_v18 }
 0x745   :  { %6757 = vmatprep.subr.bf16.mxu0 %v7050_v0 }
 0x746   :  { %v8912_v56 = vand.u32 4294901760, %v8561_v54 }
 0x748   :  { %6759 = vmatpush3.bf16.msra.mxu0 %v6758_v52  ;;  %v3543_v52 = vld [vmem:[#allocation2 + $0x2f8] sm:$0xff] }
 0x749   :  { %6760 = vmatprep.subr.bf16.mxu0 %v7050_v0  ;;  %v3598_v40 = vand.u32 4294901760, %v3543_v52 }
 0x74c   :  { %6762 = vmatpush3.bf16.msra.mxu0 %v6761_v19  ;;  %v8570_v19 = vsub.f32 %v3536_v30, %v3577_v17  ;;  %v8909_v30 = vand.u32 4294901760, %v8568_v14  ;;  %v3689_v17 = vsub.f32 %v8566_v5, %v8910_v47 }
 0x74d   :  { %6763 = vmatprep.subr.bf16.mxu0 %v7050_v0 }
 0x74e   :  { %v3696_v25 = vsub.f32 %v8568_v14, %v8909_v30  ;;  %v3690_v33 = vand.u32 4294901760, %v3689_v17  ;;  %v8908_v43 = vand.u32 4294901760, %v8570_v19 }
 0x750   :  { %6765 = vmatpush3.bf16.msra.mxu0 %v6764_v60  ;;  %v8577_v60 = vsub.f32 %v3539_v53, %v3586_v27  ;;  %v3697_v53 = vand.u32 4294901760, %v3696_v25  ;;  %v8907_v27 = vand.u32 4294901760, %v8572_v22  ;;  %v3703_v26 = vsub.f32 %v8570_v19, %v8908_v43 }
 0x751   :  { %6766 = vmatprep.subr.bf16.mxu0 %v7050_v0 }
 0x754   :  { %6768 = vmatpush3.bf16.msra.mxu0 %v6767_v63  ;;  %v3595_v63 = vand.u32 4294901760, %v3542_v57 }
 0x755   :  { %6769 = vmatprep.subr.bf16.mxu0 %v7050_v0 }
 0x756   :  { %v8585_v2 = vpack.c.bf16 %v3598_v40, %v3595_v63  ;;  %v8587_v39 = vsub.f32 %v3542_v57, %v3595_v63  ;;  %v8905_v63 = vand.u32 4294901760, %v8577_v60 }
 0x758   :  { %6771 = vmatpush3.bf16.msra.mxu0 %v6770_v41 }
 0x759   :  { %6772 = vmatprep.subr.bf16.mxu0 %v7050_v0 }
 0x75c   :  { %6774 = vmatpush3.bf16.msra.mxu0 %v6773_v21  ;;  %v8589_v21 = vsub.f32 %v3543_v52, %v3598_v40  ;;  %v8906_v52 = vand.u32 4294901760, %v8575_v3 }
 0x75d   :  { %6775 = vmatprep.subr.bf16.mxu0 %v7050_v0 }
 0x75e   :  { %v8901_v17 = vand.u32 4294901760, %v8589_v21 }
 0x760   :  { %6777 = vmatpush3.bf16.msra.mxu0 %v6776_v7 }
 0x761   :  { %6778 = vmatprep.subr.bf16.mxu0 %v7050_v0 }
 0x763   :  { %5835 = vmatmul.mubr.f32.vlgmr.msra.gmra.mrb[4].mxu0 %v8393_v44 }
 0x764   :  { %6780 = vmatpush3.bf16.msra.mxu0 %v8227_v9  ;;  %5869 = vmatprep.mubr.msk.f32.mxu0 %vm7051_vm0, %v7052_v1  ;;  %v3528_v9 = vld [vmem:[#allocation2 + $0x280] sm:$0xff] }
 0x765   :  { %6781 = vmatprep.subr.bf16.mxu0 %v7050_v0 }
 0x768   :  { %6783 = vmatpush3.bf16.msra.mxu0 %v8231_v35  ;;  %v3529_v35 = vld [vmem:[#allocation2 + $0x288] sm:$0xff] }
 0x769   :  { %6784 = vmatprep.subr.bf16.mxu0 %v7050_v0 }
 0x76c   :  { %6786 = vmatpush3.bf16.msra.mxu0 %v8235_v12  ;;  %v3553_v12 = vand.u32 4294901760, %v3528_v9 }
 0x76d   :  { %6787 = vmatprep.subr.bf16.mxu0 %v7050_v0 }
 0x76e   :  { %v8551_v51 = vsub.f32 %v3528_v9, %v3553_v12  ;;  %v8913_v9 = vand.u32 4294901760, %v8559_v29 }
 0x770   :  { %6789 = vmatpush3.bf16.msra.mxu0 %v8239_v58  ;;  %v3556_v58 = vand.u32 4294901760, %v3529_v35  ;;  %v8916_v23 = vand.u32 4294901760, %v8551_v51 }
 0x771   :  { %6790 = vmatprep.subr.bf16.mxu0 %v7050_v0 }
 0x772   :  { %v8527_v16 = vpack.c.bf16 %v3556_v58, %v3553_v12  ;;  %v8553_v38 = vsub.f32 %v3529_v35, %v3556_v58  ;;  %v3647_v62 = vsub.f32 %v8551_v51, %v8916_v23 }
 0x774   :  { %6792 = vmatpush3.bf16.msra.mxu0 %v8243_v37  ;;  %v3530_v37 = vld [vmem:[#allocation2 + $0x290] sm:$0xff]  ;;  %6804 = vmatpush3.bf16.msra.mxu1 %v8527_v16  ;;  %v8915_v41 = vand.u32 4294901760, %v8553_v38  ;;  %v3648_v35 = vand.u32 4294901760, %v3647_v62  ;;  %v3717_v62 = vsub.f32 %v8575_v3, %v8906_v52 }
 0x775   :  { %6793 = vmatprep.subr.bf16.mxu0 %v7050_v0  ;;  %6805 = vmatprep.subr.bf16.mxu1 %v7050_v0 }
 0x776   :  { %v3654_v8 = vsub.f32 %v8553_v38, %v8915_v41 }
 0x778   :  { %6795 = vmatpush3.bf16.msra.mxu0 %v8247_v32  ;;  %v3559_v32 = vand.u32 4294901760, %v3530_v37  ;;  %v3655_v12 = vand.u32 4294901760, %v3654_v8  ;;  %v3724_v8 = vsub.f32 %v8577_v60, %v8905_v63 }
 0x779   :  { %6796 = vmatprep.subr.bf16.mxu0 %v7050_v0 }
 0x77a   :  { %v8557_v45 = vsub.f32 %v3530_v37, %v3559_v32  ;;  %v3668_v37 = vsub.f32 %v8559_v29, %v8913_v9 }
 0x77c   :  { %6798 = vmatpush3.bf16.msra.mxu0 %v8255_v15  ;;  %v8531_v15 = vpack.c.bf16 %v3562_v55, %v3559_v32  ;;  %v8914_v7 = vand.u32 4294901760, %v8557_v45  ;;  %v8609_v55 = vpack.c.bf16 %v3655_v12, %v3648_v35  ;;  %v3718_v35 = vand.u32 4294901760, %v3717_v62 }
 0x77d   :  { %6799 = vmatprep.subr.bf16.mxu0 %v7050_v0  ;;  %v3725_v12 = vand.u32 4294901760, %v3724_v8  ;;  %v6854_v62 = vpack.c.bf16 %v8559_v29, %v8557_v45 }
 0x77e   :  { %6807 = vmatpush3.bf16.msra.mxu1 %v8531_v15  ;;  %v3661_v58 = vsub.f32 %v8557_v45, %v8914_v7 }
 0x77f   :  { %6808 = vmatprep.subr.bf16.mxu1 %v7050_v0 }
 0x780   :  { %6801 = vmatpush3.bf16.msra.mxu0 %v8285_v13  ;;  %v3533_v13 = vld [vmem:[#allocation2 + $0x2a8] sm:$0xff]  ;;  %v3662_v42 = vand.u32 4294901760, %v3661_v58 }
 0x781   :  { %v3568_v4 = vand.u32 4294901760, %v3533_v13 }
 0x783   :  { %5870 = vmatmul.mubr.f32.vlgmr.msra.gmra.mrb[4].mxu0 %v8393_v44  ;;  %v8535_v59 = vpack.c.bf16 %v3568_v4, %v3565_v18  ;;  %v3589_v44 = vand.u32 4294901760, %v3540_v20  ;;  %v8563_v46 = vsub.f32 %v3533_v13, %v3568_v4  ;;  %v3669_v13 = vand.u32 4294901760, %v3668_v37 }
 0x784   :  { %v3675_v18 = vsub.f32 %v8561_v54, %v8912_v56  ;;  %v8903_v37 = vand.u32 4294901760, %v8581_v34 }
 0x785   :  { %6810 = vmatpush3.bf16.msra.mxu1 %v8535_v59  ;;  %v8555_v6 = vpack.c.bf16 %v3592_v50, %v3589_v44  ;;  %v8579_v24 = vsub.f32 %v3540_v20, %v3589_v44  ;;  %v8911_v32 = vand.u32 4294901760, %v8563_v46  ;;  %v8617_v10 = vpack.c.bf16 %v3669_v13, %v3662_v42 }
 0x786   :  { %6811 = vmatprep.subr.bf16.mxu1 %v7050_v0  ;;  %v3676_v11 = vand.u32 4294901760, %v3675_v18  ;;  %v8631_v20 = vpack.c.bf16 %v3697_v53, %v3690_v33  ;;  %v3710_v44 = vsub.f32 %v8572_v22, %v8907_v27  ;;  %v3704_v50 = vand.u32 4294901760, %v3703_v26 }
 0x787   :  { %v3682_v4 = vsub.f32 %v8563_v46, %v8911_v32  ;;  %v8904_v58 = vand.u32 4294901760, %v8579_v24  ;;  %v8651_v42 = vpack.c.bf16 %v3725_v12, %v3718_v35  ;;  %v3738_v18 = vsub.f32 %v8581_v34, %v8903_v37 }
 0x788   :  { %v3711_v57 = vand.u32 4294901760, %v3710_v44  ;;  %v3752_v53 = vsub.f32 %v8589_v21, %v8901_v17  ;;  %v6857_v8 = vpack.c.bf16 %v8563_v46, %v8561_v54  ;;  %v6860_v35 = vpack.c.bf16 %v8568_v14, %v8566_v5 }
 0x789   :  { %6813 = vmatpush3.bf16.msra.mxu1 %v8539_v48  ;;  %v3683_v49 = vand.u32 4294901760, %v3682_v4  ;;  %v3731_v13 = vsub.f32 %v8579_v24, %v8904_v58  ;;  %v6863_v12 = vpack.c.bf16 %v8572_v22, %v8570_v19 }
 0x78a   :  { %6814 = vmatprep.subr.bf16.mxu1 %v7050_v0  ;;  %v8641_v40 = vpack.c.bf16 %v3711_v57, %v3704_v50  ;;  %v3753_v44 = vand.u32 4294901760, %v3752_v53  ;;  %v6851_v57 = vpack.c.bf16 %v8553_v38, %v8551_v51 }
 0x78b   :  { %v8621_v31 = vpack.c.bf16 %v3683_v49, %v3676_v11  ;;  %v3732_v4 = vand.u32 4294901760, %v3731_v13  ;;  %v3739_v11 = vand.u32 4294901760, %v3738_v18  ;;  %v8902_v49 = vand.u32 4294901760, %v8587_v39 }
 0x78c   :  { %v6866_v13 = vpack.c.bf16 %v8577_v60, %v8575_v3  ;;  %v6869_v18 = vpack.c.bf16 %v8581_v34, %v8579_v24 }
 0x78d   :  { %6816 = vmatpush3.bf16.msra.mxu1 %v8543_v61  ;;  %v8661_v25 = vpack.c.bf16 %v3739_v11, %v3732_v4  ;;  %v3745_v33 = vsub.f32 %v8587_v39, %v8902_v49  ;;  %v6872_v4 = vpack.c.bf16 %v8589_v21, %v8587_v39 }
 0x78e   :  { %6817 = vmatprep.subr.bf16.mxu1 %v7050_v0 }
 0x78f   :  { %v3746_v26 = vand.u32 4294901760, %v3745_v33 }
 0x791   :  { %6819 = vmatpush3.bf16.msra.mxu1 %v8547_v36  ;;  %v6848_v50 = vpack.c.bf16 %v3753_v44, %v3746_v26 }
 0x792   :  { %6820 = vmatprep.subr.bf16.mxu1 %v7050_v0 }
 0x795   :  { %6822 = vmatpush3.bf16.msra.mxu1 %v8555_v6 }
 0x796   :  { %6823 = vmatprep.subr.bf16.mxu1 %v7050_v0 }
 0x799   :  { %6825 = vmatpush3.bf16.msra.mxu1 %v8585_v2 }
 0x79a   :  { %6826 = vmatprep.subr.bf16.mxu1 %v7050_v0 }
 0x856   :  { %v3481_v11 = vpop.f32.mrb[4].mxu0 }
 0x857   :  { %v3485_v33 = vrot.slane %v3481_v11, 4  ;;  %v3491_v53 = vmul.f32 %v3481_v11, %v3481_v11  ;;  %v5871_v26 = vpop.f32.mrb[5].mxu0 }
 0x859   :  { %v3486_v44 = vadd.f32 %v3485_v33, %v3481_v11  ;;  %v3492_v17 = vrot.slane %v3491_v53, 4  ;;  %v4206_v33 = vld [vmem:[%s8835_s2 + $0x4] sm:$0x1] }
 0x85b   :  { %v3487_v49 = vrot.slane %v3486_v44, 2  ;;  %v3493_v37 = vadd.f32 %v3492_v17, %v3491_v53 }
 0x85d   :  { %v3488_v58 = vadd.f32 %v3487_v49, %v3486_v44  ;;  %v3494_v63 = vrot.slane %v3493_v37, 2  ;;  %v4207_v49 = vld [vmem:[%s8835_s2 + $0x9] sm:$0x1] }
 0x85f   :  { %v3489_v52 = vrot.slane %v3488_v58, 1  ;;  %v3495_v27 = vadd.f32 %v3494_v63, %v3493_v37 }
 0x861   :  { %v3490_v43 = vadd.f32 %v3489_v52, %v3488_v58  ;;  %v3496_v30 = vrot.slane %v3495_v27, 1 }
 0x863   :  { %v3497_v47 = vadd.f32 %v3496_v30, %v3495_v27  ;;  %v3498_v32 = vmul.f32 0.125, %v3490_v43 }
 0x865   :  { %v3499_v56 = vmul.f32 0.125, %v3497_v47  ;;  %v3500_v9 = vmul.f32 %v3498_v32, %v3498_v32 }
 0x867   :  { %v3501_v7 = vsub.f32 %v3499_v56, %v3500_v9 }
 0x869   :  { %v3504_v41 = vadd.f32 1e-05, %v3501_v7 }
 0x86b   :  { %7021 = vrsqrt.f32 %v3504_v41 }
 0x875   :  { %v7022_v26 = vpop.eup %7021 }
 0x876   :  { %v3506_v23 = vmul.f32 %v7022_v26, %v4206_v33 }
 0x878   :  { %v3509_v63 = vmul.f32 %v3506_v23, %v3498_v32  ;;  %v3515_v52 = vrot.slane %v3506_v23, %v7476_v28  ;;  %v8982_v23 = vand.u32 4294901760, %v8553_v38  ;;  %v8986_v38 = vand.u32 4294901760, %v8563_v46 }
 0x879   :  { %v8992_v46 = vand.u32 4294901760, %v8577_v60 }
 0x87a   :  { %v3510_v30 = vsub.f32 %v4207_v49, %v3509_v63  ;;  %v3517_v43 = vmul.f32 %v3515_v52, %v3481_v11 }
 0x87c   :  { %v3522_v47 = vrot.slane %v3510_v30, %v7476_v28  ;;  %v8981_v28 = vand.u32 4294901760, %v8551_v51  ;;  %v8985_v51 = vand.u32 4294901760, %v8561_v54  ;;  %v8991_v54 = vand.u32 4294901760, %v8575_v3 }
 0x87e   :  { %v3524_v9 = vadd.f32 %v3522_v47, %v3517_v43  ;;  %v6899_v32 = vpack.c.bf16 %v8982_v23, %v8981_v28 }
 0x880   :  { %v3525_v7 = vmul.f32 0.01, %v3524_v9 }
 0x882   :  { %v3526_v41 = vmax.f32 %v3524_v9, %v3525_v7 }
 0x884   :  { %v8693_v56 = vand.u32 4294901760, %v3526_v41 }
 0x886   :  { %v3634_v27 = vsub.f32 %v3526_v41, %v8693_v56 }
 0x888   :  { %v3635_v58 = vand.u32 4294901760, %v3634_v27 }
 0x88a   :  { %v3636_v37 = vsub.f32 %v3634_v27, %v3635_v58 }
 0x88c   :  { %v3637_v17 = vand.u32 4294901760, %v3636_v37 }
 0x88e   :  { %5905 = vmatmul.mubr.f32.vlgmr.msra.gmra.mrb[4].mxu1 %v3637_v17 }
 0x88f   :  { %6828 = vmatpush3.bf16.msra.mxu1 %v8609_v55  ;;  %5939 = vmatprep.mubr.msk.f32.mxu1 %vm7051_vm0, %v7052_v1  ;;  %v8983_v55 = vand.u32 4294901760, %v8557_v45  ;;  %v8988_v45 = vand.u32 4294901760, %v8568_v14  ;;  %v8994_v14 = vand.u32 4294901760, %v8581_v34 }
 0x890   :  { %6829 = vmatprep.subr.bf16.mxu1 %v7050_v0 }
 0x893   :  { %6831 = vmatpush3.bf16.msra.mxu1 %v8617_v10  ;;  %v8984_v10 = vand.u32 4294901760, %v8559_v29 }
 0x894   :  { %6832 = vmatprep.subr.bf16.mxu1 %v7050_v0 }
 0x897   :  { %6834 = vmatpush3.bf16.msra.mxu1 %v8621_v31  ;;  %v6902_v31 = vpack.c.bf16 %v8984_v10, %v8983_v55 }
 0x898   :  { %6835 = vmatprep.subr.bf16.mxu1 %v7050_v0 }
 0x89b   :  { %6837 = vmatpush3.bf16.msra.mxu1 %v8631_v20  ;;  %v6905_v20 = vpack.c.bf16 %v8986_v38, %v8985_v51 }
 0x89c   :  { %6838 = vmatprep.subr.bf16.mxu1 %v7050_v0 }
 0x89f   :  { %6840 = vmatpush3.bf16.msra.mxu1 %v8641_v40  ;;  %v8987_v40 = vand.u32 4294901760, %v8566_v5  ;;  %v8993_v5 = vand.u32 4294901760, %v8579_v24 }
 0x8a0   :  { %6841 = vmatprep.subr.bf16.mxu1 %v7050_v0 }
 0x8a1   :  { %v6908_v29 = vpack.c.bf16 %v8988_v45, %v8987_v40 }
 0x8a3   :  { %6843 = vmatpush3.bf16.msra.mxu1 %v8651_v42  ;;  %v8989_v42 = vand.u32 4294901760, %v8570_v19  ;;  %v8995_v19 = vand.u32 4294901760, %v8587_v39 }
 0x8a4   :  { %6844 = vmatprep.subr.bf16.mxu1 %v7050_v0 }
 0x8a7   :  { %6846 = vmatpush3.bf16.msra.mxu1 %v8661_v25  ;;  %v8990_v25 = vand.u32 4294901760, %v8572_v22  ;;  %v8996_v22 = vand.u32 4294901760, %v8589_v21 }
 0x8a8   :  { %6847 = vmatprep.subr.bf16.mxu1 %v7050_v0 }
 0x8ab   :  { %6849 = vmatpush3.bf16.msra.mxu1 %v6848_v50  ;;  %v6911_v50 = vpack.c.bf16 %v8990_v25, %v8989_v42 }
 0x8ac   :  { %6850 = vmatprep.subr.bf16.mxu1 %v7050_v0 }
 0x8ae   :  { %5940 = vmatmul.mubr.f32.vlgmr.msra.gmra.mrb[4].mxu1 %v8693_v56 }
 0x8af   :  { %6852 = vmatpush3.bf16.msra.mxu1 %v6851_v57  ;;  %5974 = vmatprep.mubr.msk.f32.mxu1 %vm7051_vm0, %v7052_v1  ;;  %v6914_v57 = vpack.c.bf16 %v8992_v46, %v8991_v54 }
 0x8b0   :  { %6853 = vmatprep.subr.bf16.mxu1 %v7050_v0 }
 0x8b3   :  { %6855 = vmatpush3.bf16.msra.mxu1 %v6854_v62  ;;  %v6917_v62 = vpack.c.bf16 %v8994_v14, %v8993_v5 }
 0x8b4   :  { %6856 = vmatprep.subr.bf16.mxu1 %v7050_v0 }
 0x8b7   :  { %6858 = vmatpush3.bf16.msra.mxu1 %v6857_v8  ;;  %v6920_v8 = vpack.c.bf16 %v8996_v22, %v8995_v19 }
 0x8b8   :  { %6859 = vmatprep.subr.bf16.mxu1 %v7050_v0 }
 0x8bb   :  { %6861 = vmatpush3.bf16.msra.mxu1 %v6860_v35 }
 0x8bc   :  { %6862 = vmatprep.subr.bf16.mxu1 %v7050_v0 }
 0x8bf   :  { %6864 = vmatpush3.bf16.msra.mxu1 %v6863_v12 }
 0x8c0   :  { %6865 = vmatprep.subr.bf16.mxu1 %v7050_v0 }
 0x8c3   :  { %6867 = vmatpush3.bf16.msra.mxu1 %v6866_v13 }
 0x8c4   :  { %6868 = vmatprep.subr.bf16.mxu1 %v7050_v0 }
 0x8c7   :  { %6870 = vmatpush3.bf16.msra.mxu1 %v6869_v18 }
 0x8c8   :  { %6871 = vmatprep.subr.bf16.mxu1 %v7050_v0 }
 0x8cb   :  { %6873 = vmatpush3.bf16.msra.mxu1 %v6872_v4 }
 0x8cc   :  { %6874 = vmatprep.subr.bf16.mxu1 %v7050_v0 }
 0x8ce   :  { %5975 = vmatmul.mubr.f32.vlgmr.msra.gmra.mrb[4].mxu1 %v3634_v27 }
 0x8cf   :  { %6876 = vmatpush3.bf16.msra.mxu1 %v8527_v16  ;;  %6009 = vmatprep.mubr.msk.f32.mxu1 %vm7051_vm0, %v7052_v1 }
 0x8d0   :  { %6877 = vmatprep.subr.bf16.mxu1 %v7050_v0 }
 0x8d3   :  { %6879 = vmatpush3.bf16.msra.mxu1 %v8531_v15 }
 0x8d4   :  { %6880 = vmatprep.subr.bf16.mxu1 %v7050_v0 }
 0x8d7   :  { %6882 = vmatpush3.bf16.msra.mxu1 %v8535_v59 }
 0x8d8   :  { %6883 = vmatprep.subr.bf16.mxu1 %v7050_v0 }
 0x8db   :  { %6885 = vmatpush3.bf16.msra.mxu1 %v8539_v48 }
 0x8dc   :  { %6886 = vmatprep.subr.bf16.mxu1 %v7050_v0 }
 0x8df   :  { %6888 = vmatpush3.bf16.msra.mxu1 %v8543_v61 }
 0x8e0   :  { %6889 = vmatprep.subr.bf16.mxu1 %v7050_v0 }
 0x8e3   :  { %6891 = vmatpush3.bf16.msra.mxu1 %v8547_v36 }
 0x8e4   :  { %6892 = vmatprep.subr.bf16.mxu1 %v7050_v0 }
 0x8e7   :  { %6894 = vmatpush3.bf16.msra.mxu1 %v8555_v6 }
 0x8e8   :  { %6895 = vmatprep.subr.bf16.mxu1 %v7050_v0 }
 0x8eb   :  { %6897 = vmatpush3.bf16.msra.mxu1 %v8585_v2 }
 0x8ec   :  { %6898 = vmatprep.subr.bf16.mxu1 %v7050_v0 }
 0x8ee   :  { %6010 = vmatmul.mubr.f32.vlgmr.msra.gmra.mrb[4].mxu1 %v3635_v58 }
 0x8ef   :  { %6900 = vmatpush3.bf16.msra.mxu1 %v6899_v32  ;;  %6044 = vmatprep.mubr.msk.f32.mxu1 %vm7051_vm0, %v7052_v1 }
 0x8f0   :  { %6901 = vmatprep.subr.bf16.mxu1 %v7050_v0 }
 0x8f3   :  { %6903 = vmatpush3.bf16.msra.mxu1 %v6902_v31 }
 0x8f4   :  { %6904 = vmatprep.subr.bf16.mxu1 %v7050_v0 }
 0x8f7   :  { %6906 = vmatpush3.bf16.msra.mxu1 %v6905_v20 }
 0x8f8   :  { %6907 = vmatprep.subr.bf16.mxu1 %v7050_v0 }
 0x8fb   :  { %6909 = vmatpush3.bf16.msra.mxu1 %v6908_v29 }
 0x8fc   :  { %6910 = vmatprep.subr.bf16.mxu1 %v7050_v0 }
 0x8ff   :  { %6912 = vmatpush3.bf16.msra.mxu1 %v6911_v50 }
 0x900   :  { %6913 = vmatprep.subr.bf16.mxu1 %v7050_v0 }
 0x903   :  { %6915 = vmatpush3.bf16.msra.mxu1 %v6914_v57 }
 0x904   :  { %6916 = vmatprep.subr.bf16.mxu1 %v7050_v0 }
 0x907   :  { %6918 = vmatpush3.bf16.msra.mxu1 %v6917_v62 }
 0x908   :  { %6919 = vmatprep.subr.bf16.mxu1 %v7050_v0 }
 0x90b   :  { %6921 = vmatpush3.bf16.msra.mxu1 %v6920_v8 }
 0x90c   :  { %6922 = vmatprep.subr.bf16.mxu1 %v7050_v0 }
 0x90e   :  { %6045 = vmatmul.mubr.f32.vlgmr.msra.gmra.mrb[4].mxu1 %v8693_v56 }
 0x90f   :  { %6924 = vmatpush3.bf16.msra.mxu1 %v8527_v16  ;;  %6079 = vmatprep.mubr.msk.f32.mxu1 %vm7051_vm0, %v7052_v1  ;;  %v4209_v1 = vld [vmem:[%s8835_s2 + $0xa] ss:$0 sm:$0xff] }
 0x910   :  { %6925 = vmatprep.subr.bf16.mxu1 %v7050_v0 }
 0x913   :  { %6927 = vmatpush3.bf16.msra.mxu1 %v8531_v15 }
 0x914   :  { %6928 = vmatprep.subr.bf16.mxu1 %v7050_v0 }
 0x917   :  { %6930 = vmatpush3.bf16.msra.mxu1 %v8535_v59 }
 0x918   :  { %6931 = vmatprep.subr.bf16.mxu1 %v7050_v0 }
 0x91b   :  { %6933 = vmatpush3.bf16.msra.mxu1 %v8539_v48 }
 0x91c   :  { %6934 = vmatprep.subr.bf16.mxu1 %v7050_v0 }
 0x91f   :  { %6936 = vmatpush3.bf16.msra.mxu1 %v8543_v61 }
 0x920   :  { %6937 = vmatprep.subr.bf16.mxu1 %v7050_v0 }
 0x923   :  { %6939 = vmatpush3.bf16.msra.mxu1 %v8547_v36 }
 0x924   :  { %6940 = vmatprep.subr.bf16.mxu1 %v7050_v0 }
 0x927   :  { %6942 = vmatpush3.bf16.msra.mxu1 %v8555_v6 }
 0x928   :  { %6943 = vmatprep.subr.bf16.mxu1 %v7050_v0 }
 0x92b   :  { %6945 = vmatpush3.bf16.msra.mxu1 %v8585_v2 }
 0x92e   :  { %6080 = vmatmul.mubr.f32.vlgmr.msra.gmra.mrb[4].mxu1 %v8693_v56 }
 0xa01   :  { %v4189_v16 = vpop.f32.mrb[4].mxu1 }
 0xa02   :  { %v6946_v15 = vadd.f32 %v4209_v1, %v4189_v16  ;;  %v6081_v59 = vpop.f32.mrb[5].mxu1 }
 0xa04   :  { %4193 = vst [vmem:[%s8836_s3] sm:$0xff] %v6946_v15 }
 0xa05   :  { %4198 = vsyncpa [#allocation3], 1 }

</bundles_post_ra>
